<compile_context>
chip_gen: v7x
topology: tpu7x:2x2x1
jax: 0.10.0
libtpu: 0.0.40
codegen_flags: <defaults>
</compile_context>

<pallas_src>
import functools

import jax
import jax.numpy as jnp
from jax.experimental import pallas as pl
from jax.experimental.pallas import tpu as pltpu


# ----------------------------------------------------------------------------
# Hardware queries (wrapper-side, trace-time only).
# ----------------------------------------------------------------------------
def _tpu_vmem_capacity_bytes():
    try:
        cap = int(pltpu.get_tpu_info().vmem_capacity_bytes)
        if cap > 0:
            return cap
    except Exception:
        pass
    try:
        kind = jax.devices()[0].device_kind.lower()
    except Exception:
        kind = ""
    if "v7" in kind:
        return 64 << 20            # v7x: 64 MiB per TensorCore
    return 128 << 20               # v5e / v6e


def _num_tensorcores_per_chip():
    try:
        kind = jax.devices()[0].device_kind.lower()
    except Exception:
        return 1
    # v7x (and megacore v4/v5p) expose 2 TensorCores; v5e/v6e have 1.
    if ("v7" in kind) or ("v5p" in kind) or ("v4" in kind):
        return 2
    return 1


# ----------------------------------------------------------------------------
# Path A: streaming-fused kernel.  x is streamed in tile-by-tile, stashed into
# the VMEM-resident output block while the per-channel sum accumulates; at the
# last tile the SE MLP runs and the resident buffer is rescaled in place.
# ----------------------------------------------------------------------------
def _resident_kernel(x_ref, w1t_ref, w2t_ref, o_ref, acc_ref, *,
                     tile_n, n_rows, n_tiles, rem):
    t = pl.program_id(0)
    last = n_tiles - 1

    @pl.when(t == 0)
    def _init():
        acc_ref[...] = jnp.zeros_like(acc_ref)

    if rem == 0:
        # Every tile is full: unconditional fast path (no masks, no branches).
        xt = x_ref[...]
        row0 = pl.multiple_of(t * tile_n, tile_n)
        o_ref[pl.ds(row0, tile_n), :] = xt
        acc_ref[...] += jnp.sum(xt.astype(jnp.float32), axis=0, keepdims=True)
    else:
        @pl.when(t < last)
        def _interior():
            xt = x_ref[...]
            row0 = pl.multiple_of(t * tile_n, tile_n)
            o_ref[pl.ds(row0, tile_n), :] = xt
            acc_ref[...] += jnp.sum(xt.astype(jnp.float32), axis=0, keepdims=True)

        @pl.when(t == last)
        def _boundary():
            # Remainder row count is a compile-time constant -> static slices,
            # no iota / compare / select mask anywhere.
            xt = x_ref[:rem, :]
            row0 = last * tile_n
            o_ref[row0:row0 + rem, :] = xt
            acc_ref[...] += jnp.sum(xt.astype(jnp.float32), axis=0, keepdims=True)

    @pl.when(t == last)
    def _finalize():
        mean = acc_ref[...] * (1.0 / float(n_rows))                       # (1, C)
        h = jnp.maximum(
            jnp.dot(mean, w1t_ref[...], preferred_element_type=jnp.float32), 0.0)
        gate = jax.nn.sigmoid(
            jnp.dot(h, w2t_ref[...], preferred_element_type=jnp.float32))  # (1, C)

        n_full = n_rows // tile_n

        def _scale_tile(i, carry):
            r0 = pl.multiple_of(i * tile_n, tile_n)
            blk = o_ref[pl.ds(r0, tile_n), :]
            o_ref[pl.ds(r0, tile_n), :] = (
                blk.astype(jnp.float32) * gate).astype(o_ref.dtype)
            return carry

        if n_full > 0:
            jax.lax.fori_loop(0, n_full, _scale_tile, 0)
        if rem > 0:
            r0 = n_full * tile_n
            blk = o_ref[r0:r0 + rem, :]
            o_ref[r0:r0 + rem, :] = (
                blk.astype(jnp.float32) * gate).astype(o_ref.dtype)


# ----------------------------------------------------------------------------
# Path B, pass 1: partial per-channel column sums (one accumulator row per
# "parallel" partition).  Ragged / overflow tiles handled with static slices.
# ----------------------------------------------------------------------------
def _colsum_kernel(x_ref, o_ref, *, tiles_per_part, total_tiles, rem):
    p = pl.program_id(0)          # partition axis (multi-TC chips only)
    t = pl.program_id(1)          # reduction axis

    @pl.when(t == 0)
    def _init():
        o_ref[...] = jnp.zeros_like(o_ref)

    tile_idx = p * tiles_per_part + t
    last = total_tiles - 1

    if rem == 0:
        @pl.when(tile_idx <= last)
        def _full():
            o_ref[...] += jnp.sum(
                x_ref[...].astype(jnp.float32), axis=0).reshape(o_ref.shape)
    else:
        @pl.when(tile_idx < last)
        def _full():
            o_ref[...] += jnp.sum(
                x_ref[...].astype(jnp.float32), axis=0).reshape(o_ref.shape)

        @pl.when(tile_idx == last)
        def _ragged():
            o_ref[...] += jnp.sum(
                x_ref[:rem, :].astype(jnp.float32), axis=0).reshape(o_ref.shape)
    # Overflow tiles (tile_idx > last, index-map-clamped) contribute nothing.


# ----------------------------------------------------------------------------
# Path B, pass 2: streaming per-channel rescale.
# ----------------------------------------------------------------------------
def _scale_kernel(x_ref, gate_ref, o_ref):
    o_ref[...] = (x_ref[...].astype(jnp.float32) * gate_ref[...]).astype(o_ref.dtype)


def attention_gates_3d(g_feats, x_feats, w1, w2, *,
                       tile_n=8192,
                       resident_tile_n=2048,
                       num_partitions=None,
                       fuse_vmem_bytes=None,
                       force_two_pass=False,
                       inplace=False):
    """Pallas implementation of AttentionGates3D.forward.

    Args:
      g_feats: (N, C) features of the gating sparse tensor (unused by the
        reference forward; kept for signature parity).
      x_feats: (N, C) features of the input sparse tensor.
      w1: (C//reduction, C) weight of Linear(C, C//reduction, bias=False).
      w2: (C, C//reduction) weight of Linear(C//reduction, C, bias=False).
      tile_n: row-tile size for the streaming (two-pass) path.
      resident_tile_n: row-tile size for the streaming-fused (resident) path.
      num_partitions: "parallel" split of the pass-1 reduction; default is the
        number of TensorCores per chip (1 on v5e/v6e, 2 on v7x).
      fuse_vmem_bytes: x-size threshold for the fused path; default is
        generation-aware (16 MiB on 64-MiB-VMEM chips, 32 MiB otherwise).
      force_two_pass: force the streaming two-pass path (testing / huge N).
      inplace: alias the output onto x_feats' buffer in the two-pass rescale
        (only valid if the caller no longer needs the unscaled features).
    Returns:
      (N, C) rescaled features (same semantics as out.F in PyTorch).
    """
    del g_feats  # g is permuted but never read in the reference forward pass.
    n, c = x_feats.shape
    hidden = w1.shape[0]
    itemsize = x_feats.dtype.itemsize

    # Pre-transpose weights (glue) so row-vector matmuls can be used directly.
    w1t = jnp.asarray(w1).T            # (C, hidden)
    w2t = jnp.asarray(w2).T            # (hidden, C)

    x_bytes = n * c * itemsize
    vmem_cap = _tpu_vmem_capacity_bytes()
    vmem_ceiling = vmem_cap - (8 << 20)          # leave headroom for the compiler

    if fuse_vmem_bytes is None:
        fuse_vmem_bytes = (16 << 20) if vmem_cap <= (64 << 20) else (32 << 20)

    # -------------------------------------------------------------------- #
    # Path A: streaming-fused (x resident in VMEM) -> 1 HBM read + 1 HBM
    # write of x, column sum overlapped with the input DMA.
    # -------------------------------------------------------------------- #
    res_tile = max(8, (int(resident_tile_n) // 8) * 8)
    if n <= res_tile:
        res_tile = n
    res_tile_bytes = res_tile * c * itemsize
    # Conservative live set: (possibly double-buffered) resident output block
    # + double-buffered input tiles + weights/scratch/slack.
    resident_vmem_need = 2 * x_bytes + 4 * res_tile_bytes + (4 << 20)

    if (not force_two_pass) and x_bytes <= fuse_vmem_bytes \
            and resident_vmem_need <= vmem_ceiling:
        n_tiles = pl.cdiv(n, res_tile)
        rem = n % res_tile
        vmem_limit = int(max(min(resident_vmem_need, vmem_ceiling), 32 << 20))
        return pl.pallas_call(
            functools.partial(_resident_kernel, tile_n=res_tile, n_rows=n,
                              n_tiles=n_tiles, rem=rem),
            out_shape=jax.ShapeDtypeStruct((n, c), x_feats.dtype),
            grid=(n_tiles,),
            in_specs=[pl.BlockSpec((res_tile, c), lambda i: (i, 0)),
                      pl.BlockSpec((c, hidden), lambda i: (0, 0)),
                      pl.BlockSpec((hidden, c), lambda i: (0, 0))],
            out_specs=pl.BlockSpec((n, c), lambda i: (0, 0)),
            scratch_shapes=[pltpu.VMEM((1, c), jnp.float32)],
            compiler_params=pltpu.CompilerParams(
                dimension_semantics=("arbitrary",),
                vmem_limit_bytes=vmem_limit),
            cost_estimate=pl.CostEstimate(
                flops=3 * n * c + 4 * c * hidden,
                transcendentals=c,
                bytes_accessed=2 * x_bytes + 2 * c * hidden * 4),
        )(x_feats, w1t, w2t)

    # -------------------------------------------------------------------- #
    # Path B: streaming two-pass (large N).
    # -------------------------------------------------------------------- #
    tile = max(8, (int(tile_n) // 8) * 8)
    if n <= tile:
        tile = n
    # Shrink the tile if it would blow the per-generation VMEM ceiling.
    while tile > 512 and (4 * tile * c * itemsize + 2 * tile * c * 4
                          + (4 << 20)) > vmem_ceiling:
        tile = max(512, (tile // 2 // 8) * 8)

    total_tiles = pl.cdiv(n, tile)
    rem = n % tile
    tile_bytes = tile * c * itemsize
    vmem_limit = int(max(min(4 * tile_bytes + 2 * tile * c * 4 + (4 << 20),
                             vmem_ceiling), 32 << 20))

    if num_partitions is None:
        num_partitions = _num_tensorcores_per_chip()
    part = max(1, min(int(num_partitions), total_tiles))
    tiles_per_part = pl.cdiv(total_tiles, part)

    # Clamp the DMA block index so overflow tiles stay in bounds; the kernel
    # skips their accumulation entirely (tile_idx > last).
    def x_index_map(p, t):
        return (jnp.minimum(p * tiles_per_part + t, total_tiles - 1), 0)

    # ---- pass 1: partial column sums, one accumulator row per partition.
    partial = pl.pallas_call(
        functools.partial(_colsum_kernel, tiles_per_part=tiles_per_part,
                          total_tiles=total_tiles, rem=rem),
        out_shape=jax.ShapeDtypeStruct((part, 1, c), jnp.float32),
        grid=(part, tiles_per_part),
        in_specs=[pl.BlockSpec((tile, c), x_index_map)],
        out_specs=pl.BlockSpec((1, 1, c), lambda p, t: (p, 0, 0)),
        compiler_params=pltpu.CompilerParams(
            dimension_semantics=("parallel", "arbitrary"),
            vmem_limit_bytes=vmem_limit),
        cost_estimate=pl.CostEstimate(
            flops=n * c, transcendentals=0,
            bytes_accessed=x_bytes + part * c * 4),
    )(x_feats)

    # ---- tiny SE MLP in plain JAX (negligible work; keeps the kernels lean).
    colsum = partial.reshape(part, c).sum(axis=0)                 # (C,)
    mean = colsum * (1.0 / n)
    h = jnp.maximum(mean @ w1t, 0.0)                              # (hidden,)
    gate = jax.nn.sigmoid(h @ w2t).astype(jnp.float32).reshape(1, c)

    # ---- pass 2: streaming per-channel rescale (partial trailing tile handled
    #      by Pallas boundary-block write masking; op is purely elementwise).
    out = pl.pallas_call(
        _scale_kernel,
        out_shape=jax.ShapeDtypeStruct((n, c), x_feats.dtype),
        grid=(total_tiles,),
        in_specs=[pl.BlockSpec((tile, c), lambda i: (i, 0)),
                  pl.BlockSpec((1, c), lambda i: (0, 0))],
        out_specs=pl.BlockSpec((tile, c), lambda i: (i, 0)),
        input_output_aliases=({0: 0} if inplace else {}),
        compiler_params=pltpu.CompilerParams(
            dimension_semantics=("parallel",),
            vmem_limit_bytes=vmem_limit),
        cost_estimate=pl.CostEstimate(
            flops=n * c, transcendentals=0,
            bytes_accessed=2 * x_bytes + c * 4),
    )(x_feats, gate)

    return out


def _reference(x_feats, w1, w2):
    """Pure-JAX reference mirroring the PyTorch forward exactly."""
    xin = x_feats.T                               # (C, N)
    y = jnp.mean(xin, axis=1)                     # (C,)   AdaptiveAvgPool1d(1)
    h = jnp.maximum(y @ w1.T, 0.0)                # (C//r,)
    y1 = jax.nn.sigmoid(h @ w2.T)[:, None]        # (C, 1)
    return (xin * y1).T                           # (N, C)


if __name__ == "__main__":
    # Module config: F_l = C = 128 channels, reduction = 16 -> hidden = 8.
    # N deliberately NOT tile-aligned to exercise the ragged-boundary paths.
    N, C, RED = 2000, 128, 16
    HID = C // RED

    key = jax.random.PRNGKey(0)
    kx, kg, k1, k2 = jax.random.split(key, 4)

    x_feats = jax.random.normal(kx, (N, C), dtype=jnp.float32)
    g_feats = jax.random.normal(kg, (N, C), dtype=jnp.float32)  # unused by forward
    # nn.Linear convention: weight shape = (out_features, in_features).
    w1 = jax.random.normal(k1, (HID, C), dtype=jnp.float32) * 0.1
    w2 = jax.random.normal(k2, (C, HID), dtype=jnp.float32) * 0.1

    ref = _reference(x_feats, w1, w2)

    # 1) Streaming-fused path, single tile (N < resident_tile_n default).
    out_fused = jax.block_until_ready(attention_gates_3d(g_feats, x_feats, w1, w2))
    assert out_fused.shape == (N, C)
    assert jnp.allclose(out_fused, ref, atol=1e-5, rtol=1e-5), \
        float(jnp.max(jnp.abs(out_fused - ref)))

    # 2) Streaming-fused path with a ragged boundary tile (N % tile != 0).
    out_fused_rt = jax.block_until_ready(
        attention_gates_3d(g_feats, x_feats, w1, w2, resident_tile_n=512))
    assert out_fused_rt.shape == (N, C)
    assert jnp.allclose(out_fused_rt, ref, atol=1e-5, rtol=1e-5), \
        float(jnp.max(jnp.abs(out_fused_rt - ref)))

    # 3) Streaming two-pass path: odd tile count -> exercises the ragged pass-1
    #    tile, clamped overflow tiles, and the boundary write masking in pass 2.
    out_2p = jax.block_until_ready(
        attention_gates_3d(g_feats, x_feats, w1, w2,
                           tile_n=288, force_two_pass=True))
    assert out_2p.shape == (N, C)
    assert jnp.allclose(out_2p, ref, atol=1e-5, rtol=1e-5), \
        float(jnp.max(jnp.abs(out_2p - ref)))

    print("KERNEL_OK")
</pallas_src>

<mosaic_0001>
module attributes {stable_mosaic.version = 11 : i64} {
  func.func @_resident_kernel(%arg0: i32, %arg1: memref<2000x128xf32, #tpu.memory_space<vmem>>, %arg2: memref<128x8xf32, #tpu.memory_space<vmem>>, %arg3: memref<8x128xf32, #tpu.memory_space<vmem>>, %arg4: memref<2000x128xf32, #tpu.memory_space<vmem>>, %arg5: memref<1x128xf32, #tpu.memory_space<vmem>>) attributes {dimension_semantics = [#tpu.dimension_semantics<arbitrary>], iteration_bounds = array<i64: 1>, scalar_prefetch = 0 : i64, scratch_operands = 1 : i64, tpu.core_type = #tpu.core_type<tc>, window_params = [{transform_indices = @transform_0, window_bounds = array<i64: 2000, 128>}, {pipeline_mode = #tpu.pipeline_mode<synchronous>, transform_indices = @transform_1, window_bounds = array<i64: 128, 8>}, {pipeline_mode = #tpu.pipeline_mode<synchronous>, transform_indices = @transform_2, window_bounds = array<i64: 8, 128>}, {pipeline_mode = #tpu.pipeline_mode<synchronous>, transform_indices = @transform_3, window_bounds = array<i64: 2000, 128>}]} {
    %c0_i32 = arith.constant 0 : i32
    %0 = arith.cmpi eq, %arg0, %c0_i32 : i32
    %1 = arith.extui %0 : i1 to i32
    %c0_i32_0 = arith.constant 0 : i32
    %2 = arith.cmpi ne, %1, %c0_i32_0 : i32
    scf.if %2 {
      %cst_9 = arith.constant 0.000000e+00 : f32
      %16 = vector.broadcast %cst_9 : f32 to vector<1x128xf32>
      %c0_10 = arith.constant 0 : index
      %c0_11 = arith.constant 0 : index
      %17 = vector.load %arg5[%c0_10, %c0_11] : memref<1x128xf32, #tpu.memory_space<vmem>>, vector<1x128xf32>
      tpu.vector_store %arg5[%c0_10, %c0_11], %16 {strides = array<i32>} : memref<1x128xf32, #tpu.memory_space<vmem>>, vector<1x128xf32>,
    } else {
    }
    %c0 = arith.constant 0 : index
    %c0_1 = arith.constant 0 : index
    %3 = vector.load %arg1[%c0, %c0_1] : memref<2000x128xf32, #tpu.memory_space<vmem>>, vector<2000x128xf32>
    %c2000_i32 = arith.constant 2000 : i32
    %4 = arith.muli %arg0, %c2000_i32 : i32
    %5 = tpu.assume_multiple %4, 2000 : i32
    %6 = arith.index_cast %5 : i32 to index
    %c0_2 = arith.constant 0 : index
    %7 = vector.load %arg4[%6, %c0_2] : memref<2000x128xf32, #tpu.memory_space<vmem>>, vector<2000x128xf32>
    tpu.vector_store %arg4[%6, %c0_2], %3 {strides = array<i32>} : memref<2000x128xf32, #tpu.memory_space<vmem>>, vector<2000x128xf32>,
    %c0_3 = arith.constant 0 : index
    %c0_4 = arith.constant 0 : index
    %8 = vector.load %arg5[%c0_3, %c0_4] : memref<1x128xf32, #tpu.memory_space<vmem>>, vector<1x128xf32>
    %cst = arith.constant dense<0.000000e+00> : vector<128xf32>
    %9 = vector.multi_reduction <add>, %3, %cst [0] : vector<2000x128xf32> to vector<128xf32>
    %10 = vector.shape_cast %9 : vector<128xf32> to vector<1x128xf32>
    %11 = arith.addf %8, %10 : vector<1x128xf32>
    %c0_5 = arith.constant 0 : index
    %c0_6 = arith.constant 0 : index
    %12 = vector.load %arg5[%c0_5, %c0_6] : memref<1x128xf32, #tpu.memory_space<vmem>>, vector<1x128xf32>
    tpu.vector_store %arg5[%c0_5, %c0_6], %11 {strides = array<i32>} : memref<1x128xf32, #tpu.memory_space<vmem>>, vector<1x128xf32>,
    %c0_i32_7 = arith.constant 0 : i32
    %13 = arith.cmpi eq, %arg0, %c0_i32_7 : i32
    %14 = arith.extui %13 : i1 to i32
    %c0_i32_8 = arith.constant 0 : i32
    %15 = arith.cmpi ne, %14, %c0_i32_8 : i32
    scf.if %15 {
      %c0_9 = arith.constant 0 : index
      %c0_10 = arith.constant 0 : index
      %16 = vector.load %arg5[%c0_9, %c0_10] : memref<1x128xf32, #tpu.memory_space<vmem>>, vector<1x128xf32>
      %cst_11 = arith.constant 5.000000e-04 : f32
      %17 = vector.broadcast %cst_11 : f32 to vector<1x128xf32>
      %18 = arith.mulf %16, %17 : vector<1x128xf32>
      %c0_12 = arith.constant 0 : index
      %c0_13 = arith.constant 0 : index
      %19 = vector.load %arg2[%c0_12, %c0_13] : memref<128x8xf32, #tpu.memory_space<vmem>>, vector<128x8xf32>
      %cst_14 = arith.constant dense<0.000000e+00> : vector<1x8xf32>
      %20 = tpu.matmul %18, %19, %cst_14 {dimension_numbers = #tpu.dot_dimension_numbers<[1], [0], [0], [1], [0, 0, 1, 1], [], []>} : vector<1x128xf32>, vector<128x8xf32>, vector<1x8xf32> -> vector<1x8xf32>
      %cst_15 = arith.constant 0.000000e+00 : f32
      %21 = vector.broadcast %cst_15 : f32 to vector<1x8xf32>
      %22 = arith.maximumf %20, %21 : vector<1x8xf32>
      %c0_16 = arith.constant 0 : index
      %c0_17 = arith.constant 0 : index
      %23 = vector.load %arg3[%c0_16, %c0_17] : memref<8x128xf32, #tpu.memory_space<vmem>>, vector<8x128xf32>
      %cst_18 = arith.constant dense<0.000000e+00> : vector<1x128xf32>
      %24 = tpu.matmul %22, %23, %cst_18 {dimension_numbers = #tpu.dot_dimension_numbers<[1], [0], [0], [1], [0, 0, 1, 1], [], []>} : vector<1x8xf32>, vector<8x128xf32>, vector<1x128xf32> -> vector<1x128xf32>
      %25 = arith.negf %24 : vector<1x128xf32>
      %26 = math.exp %25 : vector<1x128xf32>
      %cst_19 = arith.constant 1.000000e+00 : f32
      %27 = vector.broadcast %cst_19 : f32 to vector<1x128xf32>
      %28 = arith.addf %27, %26 : vector<1x128xf32>
      %29 = arith.divf %27, %28 : vector<1x128xf32>
      %c0_i32_20 = arith.constant 0 : i32
      %c2000_i32_21 = arith.constant 2000 : i32
      %30 = arith.muli %c0_i32_20, %c2000_i32_21 : i32
      %31 = tpu.assume_multiple %30, 2000 : i32
      %32 = arith.index_cast %31 : i32 to index
      %c0_22 = arith.constant 0 : index
      %33 = vector.load %arg4[%32, %c0_22] : memref<2000x128xf32, #tpu.memory_space<vmem>>, vector<2000x128xf32>
      %34 = vector.broadcast %29 : vector<1x128xf32> to vector<2000x128xf32>
      %35 = arith.mulf %33, %34 : vector<2000x128xf32>
      %36 = arith.index_cast %31 : i32 to index
      %c0_23 = arith.constant 0 : index
      %37 = vector.load %arg4[%36, %c0_23] : memref<2000x128xf32, #tpu.memory_space<vmem>>, vector<2000x128xf32>
      tpu.vector_store %arg4[%36, %c0_23], %35 {strides = array<i32>} : memref<2000x128xf32, #tpu.memory_space<vmem>>, vector<2000x128xf32>,
      %c1_i32 = arith.constant 1 : i32
    } else {
    }
    return
  }
  func.func @transform_0(%arg0: i32) -> (i32, i32) {
    %c0_i32 = arith.constant 0 : i32
    %c0_i32_0 = arith.constant 0 : i32
    return %arg0, %c0_i32 : i32, i32
  }
  func.func @transform_1(%arg0: i32) -> (i32, i32) {
    %c0_i32 = arith.constant 0 : i32
    %c0_i32_0 = arith.constant 0 : i32
    %c0_i32_1 = arith.constant 0 : i32
    return %c0_i32, %c0_i32_0 : i32, i32
  }
  func.func @transform_2(%arg0: i32) -> (i32, i32) {
    %c0_i32 = arith.constant 0 : i32
    %c0_i32_0 = arith.constant 0 : i32
    %c0_i32_1 = arith.constant 0 : i32
    return %c0_i32, %c0_i32_0 : i32, i32
  }
  func.func @transform_3(%arg0: i32) -> (i32, i32) {
    %c0_i32 = arith.constant 0 : i32
    %c0_i32_0 = arith.constant 0 : i32
    %c0_i32_1 = arith.constant 0 : i32
    return %c0_i32, %c0_i32_0 : i32, i32
  }
}

</mosaic_0001>

<bundles_post_ra>
// kernel: tpu_custom_call.1
= control target key start
LH: loop header
LB: loop body
LE: loop exit
PB: predicated region body
PF: predicated region fallthrough
CT: control target
= control target key end

     0   :  { %8 = vsyncpa [#allocation4], 0  ;;  %s2507_s0 = inlined_call_operand.hbm [shape: f32[2000,128], index: 0, kind: input, shape index: {}]   ;;  %s2508_s1 = inlined_call_operand.vmem [shape: f32[128,8], index: 1, kind: input, shape index: {}]   ;;  %s2509_s2 = inlined_call_operand.vmem [shape: f32[8,128], index: 2, kind: input, shape index: {}]   ;;  %s2510_s3 = inlined_call_operand.hbm [shape: f32[2000,128], index: 3, kind: output, shape index: {}]  }
   0x1   :  { %9 = vsyncpa [#allocation5], 0  ;;  %s2132_s12 = smov [#allocation3]   ;;  %s2084_s16 = scalar_lea.hbm %s2507_s0, 32000 }
   0x2   :  { %s15_s13 = sshll.u32 %s2132_s12, 4  ;;  %p2085_p0 = scmp.ne.s32.totalorder %s2507_s0, %s2084_s16  ;;  %s16_s13 = int_to_ptr.vmem [resolvable:$true] %s15_s13 }
   0x3   :  { %p2088_p1 = scmp.lt.u32.totalorder %s2084_s16, %s2507_s0 }
   0x5   :  { %p2090_p2 = pnand %p2088_p1, %p2085_p0 }
   0x7   :  { %2093 = shalt.err (!%p2090_p2)
}
   0x8   :  { %s2094_s21 = scalar_lea.vmem %s16_s13, 32000  ;;  %p2099_p4 = scmp.lt.s32.totalorder %s16_s13, %s16_s13 }
   0x9   :  { %p2095_p3 = scmp.ne.s32.totalorder %s16_s13, %s2094_s21  ;;  %p2100_p5 = scmp.lt.s32.totalorder %s2094_s21, %s2094_s21 }
   0xb   :  { %p2101_p6 = por %p2100_p5, %p2099_p4 }
   0xd   :  { %p2102_p7 = pnand %p2101_p6, %p2095_p3 }
   0xf   :  { %2105 = shalt.err (!%p2102_p7)
}
  0x10   :  { %s2133_s22 = smov 128   ;;  %s2134_s23 = smov 8  }
  0x11   :  { %21 = dma.hbm_to_vmem [thread:$0]  %s2507_s0, 32000, %s16_s13, [#allocation4], %s2133_s22, %s2133_s22, %s2134_s23  }
  0x12   :  { %2128 = dma.done.wait [#allocation4], 32000  }
  0x13   :  { %2129 = vsyncadd [#allocation4], 4294935296  ;;  %v2135_v0 = vmov 0.0|0.0   ;;  %v2136_v1 = vmov 0.0   ;;  %v799_v2 = vld [vmem:[%s2508_s1] sm:$0xff]  ;;  %v800_v3 = vld [vmem:[%s2508_s1 + $0x8] sm:$0xff] }
  0x14   :  { %1799 = vmatprep.subr.bf16.mxu0 %v2135_v0  ;;  %33 = vst [vmem:[#allocation2] sm:$0x1] %v2136_v1  ;;  %1794 = vmatprep.subr.mxu1 %v2136_v1  ;;  %v801_v4 = vld [vmem:[%s2508_s1 + $0x10] sm:$0xff]  ;;  %v1800_v5 = vpack.c.bf16 %v800_v3, %v799_v2  ;;  %v802_v6 = vld [vmem:[%s2508_s1 + $0x18] sm:$0xff]  ;;  %v803_v8 = vld [vmem:[%s2508_s1 + $0x20] sm:$0xff]  ;;  %vm2137_vm0 = vmmov 0  }
  0x15   :  { %v1803_v7 = vpack.c.bf16 %v802_v6, %v801_v4  ;;  %v804_v9 = vld [vmem:[%s2508_s1 + $0x28] sm:$0xff]  ;;  %v36_v12 = vld [vmem:[#allocation3 + $0x10] sm:$0xff]  ;;  %v37_v15 = vld [vmem:[#allocation3 + $0x18] sm:$0xff]  ;;  %1791 = vmatprep.mubr.msk.f32.mxu0 %vm2137_vm0, %v2136_v1  ;;  %1796 = vmatprep.mubr.msk.f32.mxu1 %vm2137_vm0, %v2136_v1  ;;  %vm887_vm1 = vcmask 64512  }
  0x16   :  { %1801 = vmatpush3.bf16.msra.mxu0 %v1800_v5  ;;  %v34_v10 = vld [vmem:[#allocation3] sm:$0xff]  ;;  %v35_v11 = vld [vmem:[#allocation3 + $0x8] sm:$0xff]  ;;  %v1806_v14 = vpack.c.bf16 %v804_v9, %v803_v8  ;;  %v806_v17 = vld [vmem:[%s2508_s1 + $0x38] sm:$0xff] }
  0x17   :  { %1802 = vmatprep.subr.bf16.mxu0 %v2135_v0  ;;  %v537_v13 = vadd.f32 %v35_v11, %v34_v10  ;;  %v805_v16 = vld [vmem:[%s2508_s1 + $0x30] sm:$0xff]  ;;  %v38_v19 = vld [vmem:[#allocation3 + $0x20] sm:$0xff]  ;;  %v41_v29 = vld [vmem:[#allocation3 + $0x38] sm:$0xff] }
  0x18   :  { %v1809_v21 = vpack.c.bf16 %v806_v17, %v805_v16  ;;  %v39_v22 = vld [vmem:[#allocation3 + $0x28] sm:$0xff]  ;;  %v807_v23 = vld [vmem:[%s2508_s1 + $0x40] sm:$0xff]  ;;  %v40_v26 = vld [vmem:[#allocation3 + $0x30] sm:$0xff] }
  0x19   :  { %v538_v18 = vadd.f32 %v537_v13, %v36_v12  ;;  %v808_v24 = vld [vmem:[%s2508_s1 + $0x48] sm:$0xff]  ;;  %v809_v30 = vld [vmem:[%s2508_s1 + $0x50] sm:$0xff]  ;;  %v810_v31 = vld [vmem:[%s2508_s1 + $0x58] sm:$0xff] }
  0x1a   :  { %1804 = vmatpush3.bf16.msra.mxu0 %v1803_v7  ;;  %v1812_v28 = vpack.c.bf16 %v808_v24, %v807_v23  ;;  %v42_v33 = vld [vmem:[#allocation3 + $0x40] sm:$0xff]  ;;  %v1815_v35 = vpack.c.bf16 %v810_v31, %v809_v30  ;;  %v43_v36 = vld [vmem:[#allocation3 + $0x48] sm:$0xff]  ;;  %v44_v40 = vld [vmem:[#allocation3 + $0x50] sm:$0xff] }
  0x1b   :  { %1805 = vmatprep.subr.bf16.mxu0 %v2135_v0  ;;  %v539_v20 = vadd.f32 %v538_v18, %v37_v15  ;;  %v811_v37 = vld [vmem:[%s2508_s1 + $0x60] sm:$0xff]  ;;  %v812_v38 = vld [vmem:[%s2508_s1 + $0x68] sm:$0xff]  ;;  %v813_v44 = vld [vmem:[%s2508_s1 + $0x70] sm:$0xff] }
  0x1c   :  { %v1818_v42 = vpack.c.bf16 %v812_v38, %v811_v37  ;;  %v45_v43 = vld [vmem:[#allocation3 + $0x58] sm:$0xff]  ;;  %v46_v47 = vld [vmem:[#allocation3 + $0x60] sm:$0xff]  ;;  %v47_v50 = vld [vmem:[#allocation3 + $0x68] sm:$0xff] }
  0x1d   :  { %v540_v25 = vadd.f32 %v539_v20, %v38_v19  ;;  %v814_v45 = vld [vmem:[%s2508_s1 + $0x78] sm:$0xff]  ;;  %v50_v56 = vld [vmem:[#allocation3 + $0x80] sm:$0xff]  ;;  %v51_v58 = vld [vmem:[#allocation3 + $0x88] sm:$0xff] }
  0x1e   :  { %1807 = vmatpush3.bf16.msra.mxu0 %v1806_v14  ;;  %v1821_v49 = vpack.c.bf16 %v814_v45, %v813_v44  ;;  %v48_v52 = vld [vmem:[#allocation3 + $0x70] sm:$0xff]  ;;  %v49_v54 = vld [vmem:[#allocation3 + $0x78] sm:$0xff]  ;;  %v54_v2 = vld [vmem:[#allocation3 + $0xa0] sm:$0xff] }
  0x1f   :  { %1808 = vmatprep.subr.bf16.mxu0 %v2135_v0  ;;  %v541_v27 = vadd.f32 %v540_v25, %v39_v22  ;;  %v52_v60 = vld [vmem:[#allocation3 + $0x90] sm:$0xff]  ;;  %v53_v62 = vld [vmem:[#allocation3 + $0x98] sm:$0xff]  ;;  %v55_v4 = vld [vmem:[#allocation3 + $0xa8] sm:$0xff] }
  0x20   :  { %v56_v6 = vld [vmem:[#allocation3 + $0xb0] sm:$0xff]  ;;  %v57_v7 = vld [vmem:[#allocation3 + $0xb8] sm:$0xff]  ;;  %v58_v9 = vld [vmem:[#allocation3 + $0xc0] sm:$0xff] }
  0x21   :  { %v542_v32 = vadd.f32 %v541_v27, %v40_v26  ;;  %v59_v11 = vld [vmem:[#allocation3 + $0xc8] sm:$0xff]  ;;  %v60_v13 = vld [vmem:[#allocation3 + $0xd0] sm:$0xff]  ;;  %v61_v15 = vld [vmem:[#allocation3 + $0xd8] sm:$0xff] }
  0x22   :  { %1810 = vmatpush3.bf16.msra.mxu0 %v1809_v21  ;;  %v62_v17 = vld [vmem:[#allocation3 + $0xe0] sm:$0xff]  ;;  %v63_v19 = vld [vmem:[#allocation3 + $0xe8] sm:$0xff]  ;;  %v64_v21 = vld [vmem:[#allocation3 + $0xf0] sm:$0xff] }
  0x23   :  { %1811 = vmatprep.subr.bf16.mxu0 %v2135_v0  ;;  %v543_v34 = vadd.f32 %v542_v32, %v41_v29  ;;  %v65_v23 = vld [vmem:[#allocation3 + $0xf8] sm:$0xff]  ;;  %v66_v25 = vld [vmem:[#allocation3 + $0x100] sm:$0xff]  ;;  %v67_v27 = vld [vmem:[#allocation3 + $0x108] sm:$0xff] }
  0x24   :  { %v68_v29 = vld [vmem:[#allocation3 + $0x110] sm:$0xff]  ;;  %v69_v31 = vld [vmem:[#allocation3 + $0x118] sm:$0xff]  ;;  %v239_v1 = vld [vmem:[#allocation3 + $0x668] sm:$0xff] }
  0x25   :  { %v544_v39 = vadd.f32 %v543_v34, %v42_v33  ;;  %v70_v33 = vld [vmem:[#allocation3 + $0x120] sm:$0xff]  ;;  %v72_v37 = vld [vmem:[#allocation3 + $0x130] sm:$0xff] }
  0x26   :  { %1813 = vmatpush3.bf16.msra.mxu0 %v1812_v28  ;;  %v76_v45 = vld [vmem:[#allocation3 + $0x150] sm:$0xff] }
  0x27   :  { %1814 = vmatprep.subr.bf16.mxu0 %v2135_v0  ;;  %v545_v41 = vadd.f32 %v544_v39, %v43_v36  ;;  %v73_v39 = vld [vmem:[#allocation3 + $0x138] sm:$0xff] }
  0x29   :  { %v546_v46 = vadd.f32 %v545_v41, %v44_v40  ;;  %v74_v41 = vld [vmem:[#allocation3 + $0x140] sm:$0xff] }
  0x2a   :  { %1816 = vmatpush3.bf16.msra.mxu0 %v1815_v35  ;;  %v71_v35 = vld [vmem:[#allocation3 + $0x128] sm:$0xff] }
  0x2b   :  { %1817 = vmatprep.subr.bf16.mxu0 %v2135_v0  ;;  %v547_v48 = vadd.f32 %v546_v46, %v45_v43  ;;  %v75_v43 = vld [vmem:[#allocation3 + $0x148] sm:$0xff] }
  0x2d   :  { %v548_v51 = vadd.f32 %v547_v48, %v46_v47  ;;  %v77_v47 = vld [vmem:[#allocation3 + $0x158] sm:$0xff] }
  0x2e   :  { %1819 = vmatpush3.bf16.msra.mxu0 %v1818_v42 }
  0x2f   :  { %1820 = vmatprep.subr.bf16.mxu0 %v2135_v0  ;;  %v549_v53 = vadd.f32 %v548_v51, %v47_v50  ;;  %v79_v51 = vld [vmem:[#allocation3 + $0x168] sm:$0xff] }
  0x31   :  { %v550_v55 = vadd.f32 %v549_v53, %v48_v52  ;;  %v80_v53 = vld [vmem:[#allocation3 + $0x170] sm:$0xff] }
  0x32   :  { %1822 = vmatpush3.bf16.msra.mxu0 %v1821_v49  ;;  %v78_v49 = vld [vmem:[#allocation3 + $0x160] sm:$0xff] }
  0x33   :  { %v551_v57 = vadd.f32 %v550_v55, %v49_v54  ;;  %v81_v55 = vld [vmem:[#allocation3 + $0x178] sm:$0xff] }
  0x35   :  { %v552_v59 = vadd.f32 %v551_v57, %v50_v56  ;;  %v82_v57 = vld [vmem:[#allocation3 + $0x180] sm:$0xff] }
  0x37   :  { %v553_v61 = vadd.f32 %v552_v59, %v51_v58  ;;  %v83_v59 = vld [vmem:[#allocation3 + $0x188] sm:$0xff] }
  0x39   :  { %v554_v63 = vadd.f32 %v553_v61, %v52_v60  ;;  %v84_v61 = vld [vmem:[#allocation3 + $0x190] sm:$0xff] }
  0x3b   :  { %v555_v3 = vadd.f32 %v554_v63, %v53_v62  ;;  %v85_v63 = vld [vmem:[#allocation3 + $0x198] sm:$0xff] }
  0x3d   :  { %v556_v5 = vadd.f32 %v555_v3, %v54_v2  ;;  %v86_v3 = vld [vmem:[#allocation3 + $0x1a0] sm:$0xff] }
  0x3f   :  { %v557_v0 = vadd.f32 %v556_v5, %v55_v4  ;;  %v87_v5 = vld [vmem:[#allocation3 + $0x1a8] sm:$0xff] }
  0x41   :  { %v558_v8 = vadd.f32 %v557_v0, %v56_v6  ;;  %v88_v0 = vld [vmem:[#allocation3 + $0x1b0] sm:$0xff] }
  0x43   :  { %v559_v10 = vadd.f32 %v558_v8, %v57_v7  ;;  %v89_v8 = vld [vmem:[#allocation3 + $0x1b8] sm:$0xff] }
  0x45   :  { %v560_v12 = vadd.f32 %v559_v10, %v58_v9  ;;  %v90_v10 = vld [vmem:[#allocation3 + $0x1c0] sm:$0xff] }
  0x47   :  { %v561_v14 = vadd.f32 %v560_v12, %v59_v11  ;;  %v91_v12 = vld [vmem:[#allocation3 + $0x1c8] sm:$0xff] }
  0x49   :  { %v562_v16 = vadd.f32 %v561_v14, %v60_v13  ;;  %v92_v14 = vld [vmem:[#allocation3 + $0x1d0] sm:$0xff] }
  0x4b   :  { %v563_v18 = vadd.f32 %v562_v16, %v61_v15  ;;  %v93_v16 = vld [vmem:[#allocation3 + $0x1d8] sm:$0xff] }
  0x4d   :  { %v564_v20 = vadd.f32 %v563_v18, %v62_v17  ;;  %v94_v18 = vld [vmem:[#allocation3 + $0x1e0] sm:$0xff] }
  0x4f   :  { %v565_v22 = vadd.f32 %v564_v20, %v63_v19  ;;  %v95_v20 = vld [vmem:[#allocation3 + $0x1e8] sm:$0xff] }
  0x51   :  { %v566_v24 = vadd.f32 %v565_v22, %v64_v21  ;;  %v96_v22 = vld [vmem:[#allocation3 + $0x1f0] sm:$0xff] }
  0x53   :  { %v567_v26 = vadd.f32 %v566_v24, %v65_v23  ;;  %v97_v24 = vld [vmem:[#allocation3 + $0x1f8] sm:$0xff] }
  0x55   :  { %v568_v28 = vadd.f32 %v567_v26, %v66_v25  ;;  %v98_v26 = vld [vmem:[#allocation3 + $0x200] sm:$0xff] }
  0x57   :  { %v569_v30 = vadd.f32 %v568_v28, %v67_v27  ;;  %v99_v28 = vld [vmem:[#allocation3 + $0x208] sm:$0xff] }
  0x59   :  { %v570_v32 = vadd.f32 %v569_v30, %v68_v29  ;;  %v100_v30 = vld [vmem:[#allocation3 + $0x210] sm:$0xff] }
  0x5b   :  { %v571_v34 = vadd.f32 %v570_v32, %v69_v31  ;;  %v101_v32 = vld [vmem:[#allocation3 + $0x218] sm:$0xff] }
  0x5d   :  { %v572_v36 = vadd.f32 %v571_v34, %v70_v33  ;;  %v102_v34 = vld [vmem:[#allocation3 + $0x220] sm:$0xff] }
  0x5f   :  { %v573_v38 = vadd.f32 %v572_v36, %v71_v35  ;;  %v103_v36 = vld [vmem:[#allocation3 + $0x228] sm:$0xff] }
  0x61   :  { %v574_v40 = vadd.f32 %v573_v38, %v72_v37  ;;  %v104_v38 = vld [vmem:[#allocation3 + $0x230] sm:$0xff] }
  0x63   :  { %v575_v42 = vadd.f32 %v574_v40, %v73_v39  ;;  %v105_v40 = vld [vmem:[#allocation3 + $0x238] sm:$0xff] }
  0x65   :  { %v576_v44 = vadd.f32 %v575_v42, %v74_v41  ;;  %v106_v42 = vld [vmem:[#allocation3 + $0x240] sm:$0xff] }
  0x67   :  { %v577_v46 = vadd.f32 %v576_v44, %v75_v43  ;;  %v107_v44 = vld [vmem:[#allocation3 + $0x248] sm:$0xff] }
  0x69   :  { %v578_v48 = vadd.f32 %v577_v46, %v76_v45  ;;  %v108_v46 = vld [vmem:[#allocation3 + $0x250] sm:$0xff] }
  0x6b   :  { %v579_v50 = vadd.f32 %v578_v48, %v77_v47  ;;  %v109_v48 = vld [vmem:[#allocation3 + $0x258] sm:$0xff] }
  0x6d   :  { %v580_v52 = vadd.f32 %v579_v50, %v78_v49  ;;  %v110_v50 = vld [vmem:[#allocation3 + $0x260] sm:$0xff] }
  0x6f   :  { %v581_v54 = vadd.f32 %v580_v52, %v79_v51  ;;  %v111_v52 = vld [vmem:[#allocation3 + $0x268] sm:$0xff] }
  0x71   :  { %v582_v56 = vadd.f32 %v581_v54, %v80_v53  ;;  %v112_v54 = vld [vmem:[#allocation3 + $0x270] sm:$0xff] }
  0x73   :  { %v583_v58 = vadd.f32 %v582_v56, %v81_v55  ;;  %v113_v56 = vld [vmem:[#allocation3 + $0x278] sm:$0xff] }
  0x75   :  { %v584_v60 = vadd.f32 %v583_v58, %v82_v57  ;;  %v114_v58 = vld [vmem:[#allocation3 + $0x280] sm:$0xff] }
  0x77   :  { %v585_v62 = vadd.f32 %v584_v60, %v83_v59  ;;  %v115_v60 = vld [vmem:[#allocation3 + $0x288] sm:$0xff] }
  0x79   :  { %v586_v2 = vadd.f32 %v585_v62, %v84_v61  ;;  %v116_v62 = vld [vmem:[#allocation3 + $0x290] sm:$0xff] }
  0x7b   :  { %v587_v4 = vadd.f32 %v586_v2, %v85_v63  ;;  %v117_v2 = vld [vmem:[#allocation3 + $0x298] sm:$0xff] }
  0x7d   :  { %v588_v6 = vadd.f32 %v587_v4, %v86_v3  ;;  %v118_v4 = vld [vmem:[#allocation3 + $0x2a0] sm:$0xff] }
  0x7f   :  { %v589_v7 = vadd.f32 %v588_v6, %v87_v5  ;;  %v119_v6 = vld [vmem:[#allocation3 + $0x2a8] sm:$0xff] }
  0x81   :  { %v590_v9 = vadd.f32 %v589_v7, %v88_v0  ;;  %v120_v7 = vld [vmem:[#allocation3 + $0x2b0] sm:$0xff] }
  0x83   :  { %v591_v11 = vadd.f32 %v590_v9, %v89_v8  ;;  %v121_v9 = vld [vmem:[#allocation3 + $0x2b8] sm:$0xff] }
  0x85   :  { %v592_v13 = vadd.f32 %v591_v11, %v90_v10  ;;  %v122_v11 = vld [vmem:[#allocation3 + $0x2c0] sm:$0xff] }
  0x87   :  { %v593_v15 = vadd.f32 %v592_v13, %v91_v12  ;;  %v123_v13 = vld [vmem:[#allocation3 + $0x2c8] sm:$0xff] }
  0x89   :  { %v594_v17 = vadd.f32 %v593_v15, %v92_v14  ;;  %v124_v15 = vld [vmem:[#allocation3 + $0x2d0] sm:$0xff] }
  0x8b   :  { %v595_v19 = vadd.f32 %v594_v17, %v93_v16  ;;  %v125_v17 = vld [vmem:[#allocation3 + $0x2d8] sm:$0xff] }
  0x8d   :  { %v596_v21 = vadd.f32 %v595_v19, %v94_v18  ;;  %v126_v19 = vld [vmem:[#allocation3 + $0x2e0] sm:$0xff] }
  0x8f   :  { %v597_v23 = vadd.f32 %v596_v21, %v95_v20  ;;  %v127_v21 = vld [vmem:[#allocation3 + $0x2e8] sm:$0xff] }
  0x91   :  { %v598_v25 = vadd.f32 %v597_v23, %v96_v22  ;;  %v128_v23 = vld [vmem:[#allocation3 + $0x2f0] sm:$0xff] }
  0x93   :  { %v599_v27 = vadd.f32 %v598_v25, %v97_v24  ;;  %v129_v25 = vld [vmem:[#allocation3 + $0x2f8] sm:$0xff] }
  0x95   :  { %v600_v29 = vadd.f32 %v599_v27, %v98_v26  ;;  %v130_v27 = vld [vmem:[#allocation3 + $0x300] sm:$0xff] }
  0x97   :  { %v601_v31 = vadd.f32 %v600_v29, %v99_v28  ;;  %v131_v29 = vld [vmem:[#allocation3 + $0x308] sm:$0xff] }
  0x99   :  { %v602_v33 = vadd.f32 %v601_v31, %v100_v30  ;;  %v132_v31 = vld [vmem:[#allocation3 + $0x310] sm:$0xff] }
  0x9b   :  { %v603_v35 = vadd.f32 %v602_v33, %v101_v32  ;;  %v133_v33 = vld [vmem:[#allocation3 + $0x318] sm:$0xff] }
  0x9d   :  { %v604_v37 = vadd.f32 %v603_v35, %v102_v34  ;;  %v134_v35 = vld [vmem:[#allocation3 + $0x320] sm:$0xff] }
  0x9f   :  { %v605_v39 = vadd.f32 %v604_v37, %v103_v36  ;;  %v135_v37 = vld [vmem:[#allocation3 + $0x328] sm:$0xff] }
  0xa1   :  { %v606_v41 = vadd.f32 %v605_v39, %v104_v38  ;;  %v136_v39 = vld [vmem:[#allocation3 + $0x330] sm:$0xff] }
  0xa3   :  { %v607_v43 = vadd.f32 %v606_v41, %v105_v40  ;;  %v137_v41 = vld [vmem:[#allocation3 + $0x338] sm:$0xff] }
  0xa5   :  { %v608_v45 = vadd.f32 %v607_v43, %v106_v42  ;;  %v138_v43 = vld [vmem:[#allocation3 + $0x340] sm:$0xff] }
  0xa7   :  { %v609_v47 = vadd.f32 %v608_v45, %v107_v44  ;;  %v139_v45 = vld [vmem:[#allocation3 + $0x348] sm:$0xff] }
  0xa9   :  { %v610_v49 = vadd.f32 %v609_v47, %v108_v46  ;;  %v140_v47 = vld [vmem:[#allocation3 + $0x350] sm:$0xff] }
  0xab   :  { %v611_v51 = vadd.f32 %v610_v49, %v109_v48  ;;  %v141_v49 = vld [vmem:[#allocation3 + $0x358] sm:$0xff] }
  0xad   :  { %v612_v53 = vadd.f32 %v611_v51, %v110_v50  ;;  %v142_v51 = vld [vmem:[#allocation3 + $0x360] sm:$0xff] }
  0xaf   :  { %v613_v55 = vadd.f32 %v612_v53, %v111_v52  ;;  %v143_v53 = vld [vmem:[#allocation3 + $0x368] sm:$0xff] }
  0xb1   :  { %v614_v57 = vadd.f32 %v613_v55, %v112_v54  ;;  %v144_v55 = vld [vmem:[#allocation3 + $0x370] sm:$0xff] }
  0xb3   :  { %v615_v59 = vadd.f32 %v614_v57, %v113_v56  ;;  %v145_v57 = vld [vmem:[#allocation3 + $0x378] sm:$0xff] }
  0xb5   :  { %v616_v61 = vadd.f32 %v615_v59, %v114_v58  ;;  %v146_v59 = vld [vmem:[#allocation3 + $0x380] sm:$0xff] }
  0xb7   :  { %v617_v63 = vadd.f32 %v616_v61, %v115_v60  ;;  %v147_v61 = vld [vmem:[#allocation3 + $0x388] sm:$0xff] }
  0xb9   :  { %v618_v3 = vadd.f32 %v617_v63, %v116_v62  ;;  %v148_v63 = vld [vmem:[#allocation3 + $0x390] sm:$0xff] }
  0xbb   :  { %v619_v5 = vadd.f32 %v618_v3, %v117_v2  ;;  %v149_v3 = vld [vmem:[#allocation3 + $0x398] sm:$0xff] }
  0xbd   :  { %v620_v0 = vadd.f32 %v619_v5, %v118_v4  ;;  %v150_v5 = vld [vmem:[#allocation3 + $0x3a0] sm:$0xff] }
  0xbf   :  { %v621_v8 = vadd.f32 %v620_v0, %v119_v6  ;;  %v151_v0 = vld [vmem:[#allocation3 + $0x3a8] sm:$0xff] }
  0xc1   :  { %v622_v10 = vadd.f32 %v621_v8, %v120_v7  ;;  %v152_v8 = vld [vmem:[#allocation3 + $0x3b0] sm:$0xff] }
  0xc3   :  { %v623_v12 = vadd.f32 %v622_v10, %v121_v9  ;;  %v153_v10 = vld [vmem:[#allocation3 + $0x3b8] sm:$0xff] }
  0xc5   :  { %v624_v14 = vadd.f32 %v623_v12, %v122_v11  ;;  %v154_v12 = vld [vmem:[#allocation3 + $0x3c0] sm:$0xff] }
  0xc7   :  { %v625_v16 = vadd.f32 %v624_v14, %v123_v13  ;;  %v155_v14 = vld [vmem:[#allocation3 + $0x3c8] sm:$0xff] }
  0xc9   :  { %v626_v18 = vadd.f32 %v625_v16, %v124_v15  ;;  %v156_v16 = vld [vmem:[#allocation3 + $0x3d0] sm:$0xff] }
  0xcb   :  { %v627_v20 = vadd.f32 %v626_v18, %v125_v17  ;;  %v157_v18 = vld [vmem:[#allocation3 + $0x3d8] sm:$0xff] }
  0xcd   :  { %v628_v22 = vadd.f32 %v627_v20, %v126_v19  ;;  %v158_v20 = vld [vmem:[#allocation3 + $0x3e0] sm:$0xff] }
  0xcf   :  { %v629_v24 = vadd.f32 %v628_v22, %v127_v21  ;;  %v159_v22 = vld [vmem:[#allocation3 + $0x3e8] sm:$0xff] }
  0xd1   :  { %v630_v26 = vadd.f32 %v629_v24, %v128_v23  ;;  %v160_v24 = vld [vmem:[#allocation3 + $0x3f0] sm:$0xff] }
  0xd3   :  { %v631_v28 = vadd.f32 %v630_v26, %v129_v25  ;;  %v161_v26 = vld [vmem:[#allocation3 + $0x3f8] sm:$0xff] }
  0xd5   :  { %v632_v30 = vadd.f32 %v631_v28, %v130_v27  ;;  %v162_v28 = vld [vmem:[#allocation3 + $0x400] sm:$0xff] }
  0xd7   :  { %v633_v32 = vadd.f32 %v632_v30, %v131_v29  ;;  %v163_v30 = vld [vmem:[#allocation3 + $0x408] sm:$0xff] }
  0xd9   :  { %v634_v34 = vadd.f32 %v633_v32, %v132_v31  ;;  %v164_v32 = vld [vmem:[#allocation3 + $0x410] sm:$0xff] }
  0xdb   :  { %v635_v36 = vadd.f32 %v634_v34, %v133_v33  ;;  %v165_v34 = vld [vmem:[#allocation3 + $0x418] sm:$0xff] }
  0xdd   :  { %v636_v38 = vadd.f32 %v635_v36, %v134_v35  ;;  %v166_v36 = vld [vmem:[#allocation3 + $0x420] sm:$0xff] }
  0xdf   :  { %v637_v40 = vadd.f32 %v636_v38, %v135_v37  ;;  %v167_v38 = vld [vmem:[#allocation3 + $0x428] sm:$0xff] }
  0xe1   :  { %v638_v42 = vadd.f32 %v637_v40, %v136_v39  ;;  %v168_v40 = vld [vmem:[#allocation3 + $0x430] sm:$0xff] }
  0xe3   :  { %v639_v44 = vadd.f32 %v638_v42, %v137_v41  ;;  %v169_v42 = vld [vmem:[#allocation3 + $0x438] sm:$0xff] }
  0xe5   :  { %v640_v46 = vadd.f32 %v639_v44, %v138_v43  ;;  %v170_v44 = vld [vmem:[#allocation3 + $0x440] sm:$0xff] }
  0xe7   :  { %v641_v48 = vadd.f32 %v640_v46, %v139_v45  ;;  %v171_v46 = vld [vmem:[#allocation3 + $0x448] sm:$0xff] }
  0xe9   :  { %v642_v50 = vadd.f32 %v641_v48, %v140_v47  ;;  %v172_v48 = vld [vmem:[#allocation3 + $0x450] sm:$0xff] }
  0xeb   :  { %v643_v52 = vadd.f32 %v642_v50, %v141_v49  ;;  %v173_v50 = vld [vmem:[#allocation3 + $0x458] sm:$0xff] }
  0xed   :  { %v644_v54 = vadd.f32 %v643_v52, %v142_v51  ;;  %v174_v52 = vld [vmem:[#allocation3 + $0x460] sm:$0xff] }
  0xef   :  { %v645_v56 = vadd.f32 %v644_v54, %v143_v53  ;;  %v175_v54 = vld [vmem:[#allocation3 + $0x468] sm:$0xff] }
  0xf1   :  { %v646_v58 = vadd.f32 %v645_v56, %v144_v55  ;;  %v176_v56 = vld [vmem:[#allocation3 + $0x470] sm:$0xff] }
  0xf3   :  { %v647_v60 = vadd.f32 %v646_v58, %v145_v57  ;;  %v177_v58 = vld [vmem:[#allocation3 + $0x478] sm:$0xff] }
  0xf5   :  { %v648_v62 = vadd.f32 %v647_v60, %v146_v59  ;;  %v178_v60 = vld [vmem:[#allocation3 + $0x480] sm:$0xff] }
  0xf7   :  { %v649_v2 = vadd.f32 %v648_v62, %v147_v61  ;;  %v179_v62 = vld [vmem:[#allocation3 + $0x488] sm:$0xff] }
  0xf9   :  { %v650_v4 = vadd.f32 %v649_v2, %v148_v63  ;;  %v180_v2 = vld [vmem:[#allocation3 + $0x490] sm:$0xff] }
  0xfb   :  { %v651_v6 = vadd.f32 %v650_v4, %v149_v3  ;;  %v181_v4 = vld [vmem:[#allocation3 + $0x498] sm:$0xff] }
  0xfd   :  { %v652_v7 = vadd.f32 %v651_v6, %v150_v5  ;;  %v182_v6 = vld [vmem:[#allocation3 + $0x4a0] sm:$0xff] }
  0xff   :  { %v653_v9 = vadd.f32 %v652_v7, %v151_v0  ;;  %v183_v7 = vld [vmem:[#allocation3 + $0x4a8] sm:$0xff] }
 0x101   :  { %v654_v11 = vadd.f32 %v653_v9, %v152_v8  ;;  %v184_v9 = vld [vmem:[#allocation3 + $0x4b0] sm:$0xff] }
 0x103   :  { %v655_v13 = vadd.f32 %v654_v11, %v153_v10  ;;  %v185_v11 = vld [vmem:[#allocation3 + $0x4b8] sm:$0xff] }
 0x105   :  { %v656_v15 = vadd.f32 %v655_v13, %v154_v12  ;;  %v186_v13 = vld [vmem:[#allocation3 + $0x4c0] sm:$0xff] }
 0x107   :  { %v657_v17 = vadd.f32 %v656_v15, %v155_v14  ;;  %v187_v15 = vld [vmem:[#allocation3 + $0x4c8] sm:$0xff] }
 0x109   :  { %v658_v19 = vadd.f32 %v657_v17, %v156_v16  ;;  %v188_v17 = vld [vmem:[#allocation3 + $0x4d0] sm:$0xff] }
 0x10b   :  { %v659_v21 = vadd.f32 %v658_v19, %v157_v18  ;;  %v189_v19 = vld [vmem:[#allocation3 + $0x4d8] sm:$0xff] }
 0x10d   :  { %v660_v23 = vadd.f32 %v659_v21, %v158_v20  ;;  %v190_v21 = vld [vmem:[#allocation3 + $0x4e0] sm:$0xff] }
 0x10f   :  { %v661_v25 = vadd.f32 %v660_v23, %v159_v22  ;;  %v191_v23 = vld [vmem:[#allocation3 + $0x4e8] sm:$0xff] }
 0x111   :  { %v662_v27 = vadd.f32 %v661_v25, %v160_v24  ;;  %v192_v25 = vld [vmem:[#allocation3 + $0x4f0] sm:$0xff] }
 0x113   :  { %v663_v29 = vadd.f32 %v662_v27, %v161_v26  ;;  %v193_v27 = vld [vmem:[#allocation3 + $0x4f8] sm:$0xff] }
 0x115   :  { %v664_v31 = vadd.f32 %v663_v29, %v162_v28  ;;  %v194_v29 = vld [vmem:[#allocation3 + $0x500] sm:$0xff] }
 0x117   :  { %v665_v33 = vadd.f32 %v664_v31, %v163_v30  ;;  %v195_v31 = vld [vmem:[#allocation3 + $0x508] sm:$0xff] }
 0x119   :  { %v666_v35 = vadd.f32 %v665_v33, %v164_v32  ;;  %v196_v33 = vld [vmem:[#allocation3 + $0x510] sm:$0xff] }
 0x11b   :  { %v667_v37 = vadd.f32 %v666_v35, %v165_v34  ;;  %v197_v35 = vld [vmem:[#allocation3 + $0x518] sm:$0xff] }
 0x11d   :  { %v668_v39 = vadd.f32 %v667_v37, %v166_v36  ;;  %v198_v37 = vld [vmem:[#allocation3 + $0x520] sm:$0xff] }
 0x11f   :  { %v669_v41 = vadd.f32 %v668_v39, %v167_v38  ;;  %v199_v39 = vld [vmem:[#allocation3 + $0x528] sm:$0xff] }
 0x121   :  { %v670_v43 = vadd.f32 %v669_v41, %v168_v40  ;;  %v200_v41 = vld [vmem:[#allocation3 + $0x530] sm:$0xff] }
 0x123   :  { %v671_v45 = vadd.f32 %v670_v43, %v169_v42  ;;  %v201_v43 = vld [vmem:[#allocation3 + $0x538] sm:$0xff] }
 0x125   :  { %v672_v47 = vadd.f32 %v671_v45, %v170_v44  ;;  %v202_v45 = vld [vmem:[#allocation3 + $0x540] sm:$0xff] }
 0x127   :  { %v673_v49 = vadd.f32 %v672_v47, %v171_v46  ;;  %v203_v47 = vld [vmem:[#allocation3 + $0x548] sm:$0xff] }
 0x129   :  { %v674_v51 = vadd.f32 %v673_v49, %v172_v48  ;;  %v204_v49 = vld [vmem:[#allocation3 + $0x550] sm:$0xff] }
 0x12b   :  { %v675_v53 = vadd.f32 %v674_v51, %v173_v50  ;;  %v205_v51 = vld [vmem:[#allocation3 + $0x558] sm:$0xff] }
 0x12d   :  { %v676_v55 = vadd.f32 %v675_v53, %v174_v52  ;;  %v206_v53 = vld [vmem:[#allocation3 + $0x560] sm:$0xff] }
 0x12f   :  { %v677_v57 = vadd.f32 %v676_v55, %v175_v54  ;;  %v207_v55 = vld [vmem:[#allocation3 + $0x568] sm:$0xff] }
 0x131   :  { %v678_v59 = vadd.f32 %v677_v57, %v176_v56  ;;  %v208_v57 = vld [vmem:[#allocation3 + $0x570] sm:$0xff] }
 0x133   :  { %v679_v61 = vadd.f32 %v678_v59, %v177_v58  ;;  %v209_v59 = vld [vmem:[#allocation3 + $0x578] sm:$0xff] }
 0x135   :  { %v680_v63 = vadd.f32 %v679_v61, %v178_v60  ;;  %v210_v61 = vld [vmem:[#allocation3 + $0x580] sm:$0xff] }
 0x137   :  { %v681_v3 = vadd.f32 %v680_v63, %v179_v62  ;;  %v211_v63 = vld [vmem:[#allocation3 + $0x588] sm:$0xff] }
 0x139   :  { %v682_v5 = vadd.f32 %v681_v3, %v180_v2  ;;  %v212_v3 = vld [vmem:[#allocation3 + $0x590] sm:$0xff] }
 0x13b   :  { %v683_v0 = vadd.f32 %v682_v5, %v181_v4  ;;  %v213_v5 = vld [vmem:[#allocation3 + $0x598] sm:$0xff] }
 0x13d   :  { %v684_v8 = vadd.f32 %v683_v0, %v182_v6  ;;  %v214_v0 = vld [vmem:[#allocation3 + $0x5a0] sm:$0xff] }
 0x13f   :  { %v685_v10 = vadd.f32 %v684_v8, %v183_v7  ;;  %v215_v8 = vld [vmem:[#allocation3 + $0x5a8] sm:$0xff] }
 0x141   :  { %v686_v12 = vadd.f32 %v685_v10, %v184_v9  ;;  %v216_v10 = vld [vmem:[#allocation3 + $0x5b0] sm:$0xff] }
 0x143   :  { %v687_v14 = vadd.f32 %v686_v12, %v185_v11  ;;  %v217_v12 = vld [vmem:[#allocation3 + $0x5b8] sm:$0xff] }
 0x145   :  { %v688_v16 = vadd.f32 %v687_v14, %v186_v13  ;;  %v218_v14 = vld [vmem:[#allocation3 + $0x5c0] sm:$0xff] }
 0x147   :  { %v689_v18 = vadd.f32 %v688_v16, %v187_v15  ;;  %v219_v16 = vld [vmem:[#allocation3 + $0x5c8] sm:$0xff] }
 0x149   :  { %v690_v20 = vadd.f32 %v689_v18, %v188_v17  ;;  %v220_v18 = vld [vmem:[#allocation3 + $0x5d0] sm:$0xff] }
 0x14b   :  { %v691_v22 = vadd.f32 %v690_v20, %v189_v19  ;;  %v221_v20 = vld [vmem:[#allocation3 + $0x5d8] sm:$0xff] }
 0x14d   :  { %v692_v24 = vadd.f32 %v691_v22, %v190_v21  ;;  %v222_v22 = vld [vmem:[#allocation3 + $0x5e0] sm:$0xff] }
 0x14f   :  { %v693_v26 = vadd.f32 %v692_v24, %v191_v23  ;;  %v223_v24 = vld [vmem:[#allocation3 + $0x5e8] sm:$0xff] }
 0x151   :  { %v694_v28 = vadd.f32 %v693_v26, %v192_v25  ;;  %v224_v26 = vld [vmem:[#allocation3 + $0x5f0] sm:$0xff] }
 0x153   :  { %v695_v30 = vadd.f32 %v694_v28, %v193_v27  ;;  %v225_v28 = vld [vmem:[#allocation3 + $0x5f8] sm:$0xff] }
 0x155   :  { %v696_v32 = vadd.f32 %v695_v30, %v194_v29  ;;  %v226_v30 = vld [vmem:[#allocation3 + $0x600] sm:$0xff] }
 0x157   :  { %v697_v34 = vadd.f32 %v696_v32, %v195_v31  ;;  %v227_v32 = vld [vmem:[#allocation3 + $0x608] sm:$0xff] }
 0x159   :  { %v698_v36 = vadd.f32 %v697_v34, %v196_v33  ;;  %v228_v34 = vld [vmem:[#allocation3 + $0x610] sm:$0xff] }
 0x15b   :  { %v699_v38 = vadd.f32 %v698_v36, %v197_v35  ;;  %v229_v36 = vld [vmem:[#allocation3 + $0x618] sm:$0xff] }
 0x15d   :  { %v700_v40 = vadd.f32 %v699_v38, %v198_v37  ;;  %v230_v38 = vld [vmem:[#allocation3 + $0x620] sm:$0xff] }
 0x15f   :  { %v701_v42 = vadd.f32 %v700_v40, %v199_v39  ;;  %v231_v40 = vld [vmem:[#allocation3 + $0x628] sm:$0xff] }
 0x161   :  { %v702_v44 = vadd.f32 %v701_v42, %v200_v41  ;;  %v232_v42 = vld [vmem:[#allocation3 + $0x630] sm:$0xff] }
 0x163   :  { %v703_v46 = vadd.f32 %v702_v44, %v201_v43  ;;  %v233_v44 = vld [vmem:[#allocation3 + $0x638] sm:$0xff] }
 0x165   :  { %v704_v48 = vadd.f32 %v703_v46, %v202_v45  ;;  %v234_v46 = vld [vmem:[#allocation3 + $0x640] sm:$0xff] }
 0x167   :  { %v705_v50 = vadd.f32 %v704_v48, %v203_v47  ;;  %v235_v48 = vld [vmem:[#allocation3 + $0x648] sm:$0xff] }
 0x169   :  { %v706_v52 = vadd.f32 %v705_v50, %v204_v49  ;;  %v236_v50 = vld [vmem:[#allocation3 + $0x650] sm:$0xff] }
 0x16b   :  { %v707_v54 = vadd.f32 %v706_v52, %v205_v51  ;;  %v237_v52 = vld [vmem:[#allocation3 + $0x658] sm:$0xff] }
 0x16d   :  { %v708_v56 = vadd.f32 %v707_v54, %v206_v53  ;;  %v238_v54 = vld [vmem:[#allocation3 + $0x660] sm:$0xff] }
 0x16f   :  { %v709_v58 = vadd.f32 %v708_v56, %v207_v55 }
 0x171   :  { %v710_v60 = vadd.f32 %v709_v58, %v208_v57  ;;  %v240_v57 = vld [vmem:[#allocation3 + $0x670] sm:$0xff] }
 0x173   :  { %v711_v62 = vadd.f32 %v710_v60, %v209_v59  ;;  %v241_v59 = vld [vmem:[#allocation3 + $0x678] sm:$0xff] }
 0x175   :  { %v712_v2 = vadd.f32 %v711_v62, %v210_v61  ;;  %v242_v61 = vld [vmem:[#allocation3 + $0x680] sm:$0xff] }
 0x177   :  { %v713_v4 = vadd.f32 %v712_v2, %v211_v63  ;;  %v243_v63 = vld [vmem:[#allocation3 + $0x688] sm:$0xff] }
 0x179   :  { %v714_v6 = vadd.f32 %v713_v4, %v212_v3  ;;  %v244_v3 = vld [vmem:[#allocation3 + $0x690] sm:$0xff] }
 0x17b   :  { %v715_v7 = vadd.f32 %v714_v6, %v213_v5  ;;  %v245_v5 = vld [vmem:[#allocation3 + $0x698] sm:$0xff] }
 0x17d   :  { %v716_v9 = vadd.f32 %v715_v7, %v214_v0  ;;  %v246_v0 = vld [vmem:[#allocation3 + $0x6a0] sm:$0xff] }
 0x17f   :  { %v717_v11 = vadd.f32 %v716_v9, %v215_v8  ;;  %v247_v8 = vld [vmem:[#allocation3 + $0x6a8] sm:$0xff] }
 0x181   :  { %v718_v13 = vadd.f32 %v717_v11, %v216_v10  ;;  %v248_v10 = vld [vmem:[#allocation3 + $0x6b0] sm:$0xff] }
 0x183   :  { %v719_v15 = vadd.f32 %v718_v13, %v217_v12  ;;  %v249_v12 = vld [vmem:[#allocation3 + $0x6b8] sm:$0xff] }
 0x185   :  { %v720_v17 = vadd.f32 %v719_v15, %v218_v14  ;;  %v250_v14 = vld [vmem:[#allocation3 + $0x6c0] sm:$0xff] }
 0x187   :  { %v721_v19 = vadd.f32 %v720_v17, %v219_v16  ;;  %v251_v16 = vld [vmem:[#allocation3 + $0x6c8] sm:$0xff] }
 0x189   :  { %v722_v21 = vadd.f32 %v721_v19, %v220_v18  ;;  %v252_v18 = vld [vmem:[#allocation3 + $0x6d0] sm:$0xff] }
 0x18b   :  { %v723_v23 = vadd.f32 %v722_v21, %v221_v20  ;;  %v253_v20 = vld [vmem:[#allocation3 + $0x6d8] sm:$0xff] }
 0x18d   :  { %v724_v25 = vadd.f32 %v723_v23, %v222_v22  ;;  %v254_v22 = vld [vmem:[#allocation3 + $0x6e0] sm:$0xff] }
 0x18f   :  { %v725_v27 = vadd.f32 %v724_v25, %v223_v24  ;;  %v255_v24 = vld [vmem:[#allocation3 + $0x6e8] sm:$0xff] }
 0x191   :  { %v726_v29 = vadd.f32 %v725_v27, %v224_v26  ;;  %v256_v26 = vld [vmem:[#allocation3 + $0x6f0] sm:$0xff] }
 0x193   :  { %v727_v31 = vadd.f32 %v726_v29, %v225_v28  ;;  %v257_v28 = vld [vmem:[#allocation3 + $0x6f8] sm:$0xff] }
 0x195   :  { %v728_v33 = vadd.f32 %v727_v31, %v226_v30  ;;  %v258_v30 = vld [vmem:[#allocation3 + $0x700] sm:$0xff] }
 0x197   :  { %v729_v35 = vadd.f32 %v728_v33, %v227_v32  ;;  %v259_v32 = vld [vmem:[#allocation3 + $0x708] sm:$0xff] }
 0x199   :  { %v730_v37 = vadd.f32 %v729_v35, %v228_v34  ;;  %v260_v34 = vld [vmem:[#allocation3 + $0x710] sm:$0xff] }
 0x19b   :  { %v731_v39 = vadd.f32 %v730_v37, %v229_v36  ;;  %v261_v36 = vld [vmem:[#allocation3 + $0x718] sm:$0xff] }
 0x19d   :  { %v732_v41 = vadd.f32 %v731_v39, %v230_v38  ;;  %v262_v38 = vld [vmem:[#allocation3 + $0x720] sm:$0xff] }
 0x19f   :  { %v733_v43 = vadd.f32 %v732_v41, %v231_v40  ;;  %v263_v40 = vld [vmem:[#allocation3 + $0x728] sm:$0xff] }
 0x1a1   :  { %v734_v45 = vadd.f32 %v733_v43, %v232_v42  ;;  %v264_v42 = vld [vmem:[#allocation3 + $0x730] sm:$0xff] }
 0x1a3   :  { %v735_v47 = vadd.f32 %v734_v45, %v233_v44  ;;  %v265_v44 = vld [vmem:[#allocation3 + $0x738] sm:$0xff] }
 0x1a5   :  { %v736_v49 = vadd.f32 %v735_v47, %v234_v46  ;;  %v266_v46 = vld [vmem:[#allocation3 + $0x740] sm:$0xff] }
 0x1a7   :  { %v737_v51 = vadd.f32 %v736_v49, %v235_v48  ;;  %v267_v48 = vld [vmem:[#allocation3 + $0x748] sm:$0xff] }
 0x1a9   :  { %v738_v53 = vadd.f32 %v737_v51, %v236_v50  ;;  %v268_v50 = vld [vmem:[#allocation3 + $0x750] sm:$0xff] }
 0x1ab   :  { %v739_v55 = vadd.f32 %v738_v53, %v237_v52  ;;  %v269_v52 = vld [vmem:[#allocation3 + $0x758] sm:$0xff] }
 0x1ad   :  { %v740_v56 = vadd.f32 %v739_v55, %v238_v54  ;;  %v270_v54 = vld [vmem:[#allocation3 + $0x760] sm:$0xff] }
 0x1af   :  { %v741_v58 = vadd.f32 %v740_v56, %v239_v1  ;;  %v271_v1 = vld [vmem:[#allocation3 + $0x768] sm:$0xff] }
 0x1b1   :  { %v742_v60 = vadd.f32 %v741_v58, %v240_v57  ;;  %v272_v57 = vld [vmem:[#allocation3 + $0x770] sm:$0xff] }
 0x1b3   :  { %v743_v62 = vadd.f32 %v742_v60, %v241_v59  ;;  %v273_v59 = vld [vmem:[#allocation3 + $0x778] sm:$0xff] }
 0x1b5   :  { %v744_v2 = vadd.f32 %v743_v62, %v242_v61  ;;  %v274_v61 = vld [vmem:[#allocation3 + $0x780] sm:$0xff] }
 0x1b7   :  { %v745_v4 = vadd.f32 %v744_v2, %v243_v63  ;;  %v275_v63 = vld [vmem:[#allocation3 + $0x788] sm:$0xff] }
 0x1b9   :  { %v746_v6 = vadd.f32 %v745_v4, %v244_v3  ;;  %v276_v3 = vld [vmem:[#allocation3 + $0x790] sm:$0xff] }
 0x1bb   :  { %v747_v7 = vadd.f32 %v746_v6, %v245_v5  ;;  %v277_v5 = vld [vmem:[#allocation3 + $0x798] sm:$0xff] }
 0x1bd   :  { %v748_v9 = vadd.f32 %v747_v7, %v246_v0  ;;  %v278_v0 = vld [vmem:[#allocation3 + $0x7a0] sm:$0xff] }
 0x1bf   :  { %v749_v11 = vadd.f32 %v748_v9, %v247_v8  ;;  %v279_v8 = vld [vmem:[#allocation3 + $0x7a8] sm:$0xff] }
 0x1c1   :  { %v750_v13 = vadd.f32 %v749_v11, %v248_v10  ;;  %v280_v10 = vld [vmem:[#allocation3 + $0x7b0] sm:$0xff] }
 0x1c3   :  { %v751_v15 = vadd.f32 %v750_v13, %v249_v12  ;;  %v281_v12 = vld [vmem:[#allocation3 + $0x7b8] sm:$0xff] }
 0x1c5   :  { %v752_v17 = vadd.f32 %v751_v15, %v250_v14  ;;  %v282_v14 = vld [vmem:[#allocation3 + $0x7c0] sm:$0xff] }
 0x1c7   :  { %v753_v19 = vadd.f32 %v752_v17, %v251_v16  ;;  %v283_v16 = vld [vmem:[#allocation3 + $0x7c8] sm:$0xff] }
 0x1c9   :  { %v754_v21 = vadd.f32 %v753_v19, %v252_v18 }
 0x1cb   :  { %v755_v23 = vadd.f32 %v754_v21, %v253_v20 }
 0x1cd   :  { %v756_v25 = vadd.f32 %v755_v23, %v254_v22 }
 0x1cf   :  { %v757_v27 = vadd.f32 %v756_v25, %v255_v24  ;;  %v536_v24 = vld [vmem:[#allocation2] sm:$0x1] }
 0x1d1   :  { %v758_v29 = vadd.f32 %v757_v27, %v256_v26 }
 0x1d3   :  { %v759_v31 = vadd.f32 %v758_v29, %v257_v28  ;;  %v886_v29 = vld [vmem:[%s2509_s2] sm:$0xff]  ;;  %s2138_s2 = smov [#allocation6]  }
 0x1d4   :  { %1795 = vmatpush3.msra.mxu1 %v886_v29  ;;  %v1859_v29 = vld [vmem:[#allocation3 + $0xc8] sm:$0xff]  ;;  %s2479_s5 = sshll.u32 %s2138_s2, 4  ;;  %s1727_s5 = int_to_ptr.vmem [resolvable:$true] %s2479_s5 }
 0x1d5   :  { %v760_v33 = vadd.f32 %v759_v31, %v258_v30  ;;  %s2106_s6 = scalar_lea.vmem %s1727_s5, 32000  ;;  %p2111_p9 = scmp.lt.s32.totalorder %s1727_s5, %s1727_s5 }
 0x1d6   :  { %p2107_p8 = scmp.ne.s32.totalorder %s1727_s5, %s2106_s6  ;;  %p2112_p10 = scmp.lt.s32.totalorder %s2106_s6, %s2106_s6 }
 0x1d7   :  { %v761_v35 = vadd.f32 %v760_v33, %v259_v32 }
 0x1d8   :  { %p2113_p11 = por %p2112_p10, %p2111_p9 }
 0x1d9   :  { %v762_v37 = vadd.f32 %v761_v35, %v260_v34 }
 0x1da   :  { %p2114_p12 = pnand %p2113_p11, %p2107_p8 }
 0x1db   :  { %v763_v39 = vadd.f32 %v762_v37, %v261_v36 }
 0x1dd   :  { %v764_v41 = vadd.f32 %v763_v39, %v262_v38  ;;  %v1217_v38 = vlaneseq }
 0x1df   :  { %v765_v43 = vadd.f32 %v764_v41, %v263_v40  ;;  %v1218_v39 = vshrl.u32 %v1217_v38, 7 }
 0x1e1   :  { %v766_v45 = vadd.f32 %v765_v43, %v264_v42  ;;  %v1219_v40 = vsub.s32 0, %v1218_v39  ;;  %v1834_v43 = vld [vmem:[#allocation3] sm:$0xff]  ;;  %v1864_v39 = vld [vmem:[#allocation3 + $0xf0] sm:$0xff] }
 0x1e3   :  { %v767_v47 = vadd.f32 %v766_v45, %v265_v44  ;;  %v1835_v45 = vld [vmem:[#allocation3 + $0x8] sm:$0xff] }
 0x1e5   :  { %v768_v49 = vadd.f32 %v767_v47, %v266_v46  ;;  %v1836_v47 = vld [vmem:[#allocation3 + $0x10] sm:$0xff] }
 0x1e7   :  { %v769_v51 = vadd.f32 %v768_v49, %v267_v48  ;;  %v1837_v49 = vld [vmem:[#allocation3 + $0x18] sm:$0xff] }
 0x1e9   :  { %v770_v53 = vadd.f32 %v769_v51, %v268_v50  ;;  %v1838_v51 = vld [vmem:[#allocation3 + $0x20] sm:$0xff] }
 0x1eb   :  { %v771_v55 = vadd.f32 %v770_v53, %v269_v52  ;;  %v1839_v53 = vld [vmem:[#allocation3 + $0x28] sm:$0xff] }
 0x1ed   :  { %v772_v56 = vadd.f32 %v771_v55, %v270_v54  ;;  %v1840_v55 = vld [vmem:[#allocation3 + $0x30] sm:$0xff] }
 0x1ef   :  { %v773_v58 = vadd.f32 %v772_v56, %v271_v1  ;;  %v1841_v56 = vld [vmem:[#allocation3 + $0x38] sm:$0xff] }
 0x1f1   :  { %v774_v60 = vadd.f32 %v773_v58, %v272_v57  ;;  %v1842_v58 = vld [vmem:[#allocation3 + $0x40] sm:$0xff] }
 0x1f3   :  { %v775_v62 = vadd.f32 %v774_v60, %v273_v59  ;;  %v1843_v60 = vld [vmem:[#allocation3 + $0x48] sm:$0xff] }
 0x1f5   :  { %v776_v2 = vadd.f32 %v775_v62, %v274_v61  ;;  %v1844_v62 = vld [vmem:[#allocation3 + $0x50] sm:$0xff] }
 0x1f7   :  { %v777_v4 = vadd.f32 %v776_v2, %v275_v63  ;;  %v1845_v2 = vld [vmem:[#allocation3 + $0x58] sm:$0xff] }
 0x1f9   :  { %v778_v6 = vadd.f32 %v777_v4, %v276_v3  ;;  %v1846_v4 = vld [vmem:[#allocation3 + $0x60] sm:$0xff] }
 0x1fb   :  { %v779_v7 = vadd.f32 %v778_v6, %v277_v5  ;;  %v1847_v6 = vld [vmem:[#allocation3 + $0x68] sm:$0xff] }
 0x1fd   :  { %v780_v9 = vadd.f32 %v779_v7, %v278_v0  ;;  %v1848_v7 = vld [vmem:[#allocation3 + $0x70] sm:$0xff] }
 0x1ff   :  { %v781_v11 = vadd.f32 %v780_v9, %v279_v8  ;;  %v1849_v9 = vld [vmem:[#allocation3 + $0x78] sm:$0xff] }
 0x201   :  { %v782_v13 = vadd.f32 %v781_v11, %v280_v10  ;;  %v1850_v11 = vld [vmem:[#allocation3 + $0x80] sm:$0xff] }
 0x203   :  { %v783_v15 = vadd.f32 %v782_v13, %v281_v12  ;;  %v1851_v13 = vld [vmem:[#allocation3 + $0x88] sm:$0xff] }
 0x205   :  { %v784_v17 = vadd.f32 %v783_v15, %v282_v14  ;;  %v1852_v15 = vld [vmem:[#allocation3 + $0x90] sm:$0xff] }
 0x207   :  { %v785_v18 = vadd.f32 %v784_v17, %v283_v16  ;;  %v1853_v17 = vld [vmem:[#allocation3 + $0x98] sm:$0xff] }
 0x209   :  { %v786_v19 = vrot.slane %v785_v18, 4 }
 0x20b   :  { %v787_v20 = vadd.f32 %v786_v19, %v785_v18  ;;  %v1854_v19 = vld [vmem:[#allocation3 + $0xa0] sm:$0xff] }
 0x20d   :  { %v788_v21 = vrot.slane %v787_v20, 2 }
 0x20f   :  { %v789_v22 = vadd.f32 %v788_v21, %v787_v20  ;;  %v1855_v21 = vld [vmem:[#allocation3 + $0xa8] sm:$0xff] }
 0x211   :  { %v790_v23 = vrot.slane %v789_v22, 1 }
 0x213   :  { %v791_v25 = vadd.f32 %v790_v23, %v789_v22  ;;  %v1856_v23 = vld [vmem:[#allocation3 + $0xb0] sm:$0xff] }
 0x215   :  { %v792_v26 = vadd.f32 %v791_v25, %v536_v24  ;;  %v1857_v25 = vld [vmem:[#allocation3 + $0xb8] sm:$0xff] }
 0x217   :  { %793 = vst [vmem:[#allocation2] sm:$0x1] %v792_v26 }
 0x21e   :  { %v797_v27 = vld [vmem:[#allocation2] sm:$0x1] }
 0x21f   :  { %v798_v28 = vmul.f32 0.0005, %v797_v27  ;;  %v1858_v27 = vld [vmem:[#allocation3 + $0xc0] sm:$0xff] }
 0x221   :  { %1792 = vmatmul.mubr.f32.vlgmr.msra.gmra.mrb[0].mxu0 %v798_v28 }
 0x2f4   :  { %v881_v30 = vpop.f32.mrb[0].mxu0 }
 0x2f5   :  { %v885_v31 = vmax.f32 %v881_v30, 0.0  ;;  %v1793_v32 = vpop.f32.mrb[1].mxu0 }
 0x2f7   :  { %1797 = vmatmul.mubr.msk.f32.vlgmr.msra.gmra.mrb[0].mxu1 %vm887_vm1, %v885_v31  ;;  %v1860_v31 = vld [vmem:[#allocation3 + $0xd0] sm:$0xff] }
 0x3ca   :  { %v957_v33 = vpop.f32.mrb[0].mxu1 }
 0x3cb   :  { %v1739_v34 = vmul.f32 -1.442695, %v957_v33  ;;  %v1798_v35 = vpop.f32.mrb[1].mxu1  ;;  %v1861_v33 = vld [vmem:[#allocation3 + $0xd8] sm:$0xff] }
 0x3cc   :  { %v1862_v35 = vld [vmem:[#allocation3 + $0xe0] sm:$0xff] }
 0x3cd   :  { %1830 = vpow2.f32 %v1739_v34 }
 0x3d7   :  { %v1831_v36 = vpop.eup %1830 }
 0x3d8   :  { %v964_v37 = vadd.f32 1.0, %v1831_v36 }
 0x3da   :  { %1832 = vrcp.f32 %v964_v37  ;;  %v1863_v37 = vld [vmem:[#allocation3 + $0xe8] sm:$0xff] }
 0x3e4   :  { %v1833_v41 = vpop.eup %1832 }
 0x3e5   :  { %v2237_v42 = vrot.slane %v1833_v41, %v1219_v40  ;;  %v1865_v41 = vld [vmem:[#allocation3 + $0xf8] sm:$0xff] }
 0x3e7   :  { %v1221_v44 = vmul.f32 %v1834_v43, %v2237_v42  ;;  %v1222_v46 = vmul.f32 %v1835_v45, %v2237_v42  ;;  %v1223_v48 = vmul.f32 %v1836_v47, %v2237_v42  ;;  %v1224_v50 = vmul.f32 %v1837_v49, %v2237_v42 }
 0x3e8   :  { %v1225_v52 = vmul.f32 %v1838_v51, %v2237_v42  ;;  %v1226_v54 = vmul.f32 %v1839_v53, %v2237_v42  ;;  %v1227_v1 = vmul.f32 %v1840_v55, %v2237_v42  ;;  %v1228_v57 = vmul.f32 %v1841_v56, %v2237_v42 }
 0x3e9   :  { %v1229_v59 = vmul.f32 %v1842_v58, %v2237_v42  ;;  %v1230_v61 = vmul.f32 %v1843_v60, %v2237_v42  ;;  %v1231_v63 = vmul.f32 %v1844_v62, %v2237_v42  ;;  %v1232_v3 = vmul.f32 %v1845_v2, %v2237_v42  ;;  %1471 = vst [vmem:[#allocation6] sm:$0xff] %v1221_v44  ;;  %v1866_v44 = vld [vmem:[#allocation3 + $0x100] sm:$0xff] }
 0x3ea   :  { %1472 = vst [vmem:[#allocation6 + $0x8] sm:$0xff] %v1222_v46  ;;  %1473 = vst [vmem:[#allocation6 + $0x10] sm:$0xff] %v1223_v48  ;;  %v1233_v5 = vmul.f32 %v1846_v4, %v2237_v42  ;;  %v1234_v0 = vmul.f32 %v1847_v6, %v2237_v42  ;;  %v1235_v8 = vmul.f32 %v1848_v7, %v2237_v42  ;;  %v1867_v46 = vld [vmem:[#allocation3 + $0x108] sm:$0xff]  ;;  %v1868_v48 = vld [vmem:[#allocation3 + $0x110] sm:$0xff] }
 0x3eb   :  { %1474 = vst [vmem:[#allocation6 + $0x18] sm:$0xff] %v1224_v50  ;;  %v1236_v10 = vmul.f32 %v1849_v9, %v2237_v42  ;;  %1475 = vst [vmem:[#allocation6 + $0x20] sm:$0xff] %v1225_v52  ;;  %v1237_v12 = vmul.f32 %v1850_v11, %v2237_v42  ;;  %v1238_v14 = vmul.f32 %v1851_v13, %v2237_v42  ;;  %v1869_v50 = vld [vmem:[#allocation3 + $0x118] sm:$0xff]  ;;  %v1870_v52 = vld [vmem:[#allocation3 + $0x120] sm:$0xff] }
 0x3ec   :  { %1476 = vst [vmem:[#allocation6 + $0x28] sm:$0xff] %v1226_v54  ;;  %1477 = vst [vmem:[#allocation6 + $0x30] sm:$0xff] %v1227_v1  ;;  %v1239_v16 = vmul.f32 %v1852_v15, %v2237_v42  ;;  %v1240_v18 = vmul.f32 %v1853_v17, %v2237_v42  ;;  %v1241_v20 = vmul.f32 %v1854_v19, %v2237_v42  ;;  %v1871_v54 = vld [vmem:[#allocation3 + $0x128] sm:$0xff]  ;;  %v1872_v1 = vld [vmem:[#allocation3 + $0x130] sm:$0xff] }
 0x3ed   :  { %1478 = vst [vmem:[#allocation6 + $0x38] sm:$0xff] %v1228_v57  ;;  %1479 = vst [vmem:[#allocation6 + $0x40] sm:$0xff] %v1229_v59  ;;  %v1242_v22 = vmul.f32 %v1855_v21, %v2237_v42  ;;  %v1243_v24 = vmul.f32 %v1856_v23, %v2237_v42  ;;  %v1244_v26 = vmul.f32 %v1857_v25, %v2237_v42  ;;  %v1873_v57 = vld [vmem:[#allocation3 + $0x138] sm:$0xff]  ;;  %v1874_v59 = vld [vmem:[#allocation3 + $0x140] sm:$0xff] }
 0x3ee   :  { %1480 = vst [vmem:[#allocation6 + $0x48] sm:$0xff] %v1230_v61  ;;  %1481 = vst [vmem:[#allocation6 + $0x50] sm:$0xff] %v1231_v63  ;;  %v1245_v28 = vmul.f32 %v1858_v27, %v2237_v42  ;;  %v1246_v30 = vmul.f32 %v1859_v29, %v2237_v42  ;;  %v1247_v32 = vmul.f32 %v1860_v31, %v2237_v42  ;;  %v1875_v61 = vld [vmem:[#allocation3 + $0x148] sm:$0xff]  ;;  %v1876_v63 = vld [vmem:[#allocation3 + $0x150] sm:$0xff] }
 0x3ef   :  { %1482 = vst [vmem:[#allocation6 + $0x58] sm:$0xff] %v1232_v3  ;;  %1483 = vst [vmem:[#allocation6 + $0x60] sm:$0xff] %v1233_v5  ;;  %v1248_v34 = vmul.f32 %v1861_v33, %v2237_v42  ;;  %v1249_v36 = vmul.f32 %v1862_v35, %v2237_v42  ;;  %v1250_v38 = vmul.f32 %v1863_v37, %v2237_v42  ;;  %v1877_v3 = vld [vmem:[#allocation3 + $0x158] sm:$0xff]  ;;  %v1878_v5 = vld [vmem:[#allocation3 + $0x160] sm:$0xff] }
 0x3f0   :  { %1484 = vst [vmem:[#allocation6 + $0x68] sm:$0xff] %v1234_v0  ;;  %1485 = vst [vmem:[#allocation6 + $0x70] sm:$0xff] %v1235_v8  ;;  %v1251_v40 = vmul.f32 %v1864_v39, %v2237_v42  ;;  %v1252_v43 = vmul.f32 %v1865_v41, %v2237_v42  ;;  %v1253_v45 = vmul.f32 %v1866_v44, %v2237_v42  ;;  %v1879_v0 = vld [vmem:[#allocation3 + $0x168] sm:$0xff]  ;;  %v1880_v8 = vld [vmem:[#allocation3 + $0x170] sm:$0xff] }
 0x3f1   :  { %1486 = vst [vmem:[#allocation6 + $0x78] sm:$0xff] %v1236_v10  ;;  %1487 = vst [vmem:[#allocation6 + $0x80] sm:$0xff] %v1237_v12  ;;  %v1254_v47 = vmul.f32 %v1867_v46, %v2237_v42  ;;  %v1255_v49 = vmul.f32 %v1868_v48, %v2237_v42  ;;  %v1256_v51 = vmul.f32 %v1869_v50, %v2237_v42  ;;  %v1881_v10 = vld [vmem:[#allocation3 + $0x178] sm:$0xff]  ;;  %v1882_v12 = vld [vmem:[#allocation3 + $0x180] sm:$0xff] }
 0x3f2   :  { %1488 = vst [vmem:[#allocation6 + $0x88] sm:$0xff] %v1238_v14  ;;  %1489 = vst [vmem:[#allocation6 + $0x90] sm:$0xff] %v1239_v16  ;;  %v1257_v53 = vmul.f32 %v1870_v52, %v2237_v42  ;;  %v1258_v55 = vmul.f32 %v1871_v54, %v2237_v42  ;;  %v1259_v56 = vmul.f32 %v1872_v1, %v2237_v42  ;;  %v1883_v14 = vld [vmem:[#allocation3 + $0x188] sm:$0xff]  ;;  %v1884_v16 = vld [vmem:[#allocation3 + $0x190] sm:$0xff] }
 0x3f3   :  { %1490 = vst [vmem:[#allocation6 + $0x98] sm:$0xff] %v1240_v18  ;;  %1491 = vst [vmem:[#allocation6 + $0xa0] sm:$0xff] %v1241_v20  ;;  %v1260_v58 = vmul.f32 %v1873_v57, %v2237_v42  ;;  %v1261_v60 = vmul.f32 %v1874_v59, %v2237_v42  ;;  %v1262_v62 = vmul.f32 %v1875_v61, %v2237_v42  ;;  %v1885_v18 = vld [vmem:[#allocation3 + $0x198] sm:$0xff]  ;;  %v1886_v20 = vld [vmem:[#allocation3 + $0x1a0] sm:$0xff] }
 0x3f4   :  { %1492 = vst [vmem:[#allocation6 + $0xa8] sm:$0xff] %v1242_v22  ;;  %1493 = vst [vmem:[#allocation6 + $0xb0] sm:$0xff] %v1243_v24  ;;  %v1263_v2 = vmul.f32 %v1876_v63, %v2237_v42  ;;  %v1264_v4 = vmul.f32 %v1877_v3, %v2237_v42  ;;  %v1265_v6 = vmul.f32 %v1878_v5, %v2237_v42  ;;  %v1887_v22 = vld [vmem:[#allocation3 + $0x1a8] sm:$0xff]  ;;  %v1888_v24 = vld [vmem:[#allocation3 + $0x1b0] sm:$0xff] }
 0x3f5   :  { %1494 = vst [vmem:[#allocation6 + $0xb8] sm:$0xff] %v1244_v26  ;;  %1495 = vst [vmem:[#allocation6 + $0xc0] sm:$0xff] %v1245_v28  ;;  %v1266_v7 = vmul.f32 %v1879_v0, %v2237_v42  ;;  %v1267_v9 = vmul.f32 %v1880_v8, %v2237_v42  ;;  %v1268_v11 = vmul.f32 %v1881_v10, %v2237_v42  ;;  %v1889_v26 = vld [vmem:[#allocation3 + $0x1b8] sm:$0xff]  ;;  %v1890_v28 = vld [vmem:[#allocation3 + $0x1c0] sm:$0xff] }
 0x3f6   :  { %1496 = vst [vmem:[#allocation6 + $0xc8] sm:$0xff] %v1246_v30  ;;  %1497 = vst [vmem:[#allocation6 + $0xd0] sm:$0xff] %v1247_v32  ;;  %v1269_v13 = vmul.f32 %v1882_v12, %v2237_v42  ;;  %v1270_v15 = vmul.f32 %v1883_v14, %v2237_v42  ;;  %v1271_v17 = vmul.f32 %v1884_v16, %v2237_v42  ;;  %v1891_v30 = vld [vmem:[#allocation3 + $0x1c8] sm:$0xff]  ;;  %v1892_v32 = vld [vmem:[#allocation3 + $0x1d0] sm:$0xff] }
 0x3f7   :  { %1498 = vst [vmem:[#allocation6 + $0xd8] sm:$0xff] %v1248_v34  ;;  %1499 = vst [vmem:[#allocation6 + $0xe0] sm:$0xff] %v1249_v36  ;;  %v1272_v19 = vmul.f32 %v1885_v18, %v2237_v42  ;;  %v1273_v21 = vmul.f32 %v1886_v20, %v2237_v42  ;;  %v1274_v23 = vmul.f32 %v1887_v22, %v2237_v42  ;;  %v1893_v34 = vld [vmem:[#allocation3 + $0x1d8] sm:$0xff]  ;;  %v1894_v36 = vld [vmem:[#allocation3 + $0x1e0] sm:$0xff] }
 0x3f8   :  { %1500 = vst [vmem:[#allocation6 + $0xe8] sm:$0xff] %v1250_v38  ;;  %1501 = vst [vmem:[#allocation6 + $0xf0] sm:$0xff] %v1251_v40  ;;  %v1275_v25 = vmul.f32 %v1888_v24, %v2237_v42  ;;  %v1276_v27 = vmul.f32 %v1889_v26, %v2237_v42  ;;  %v1277_v29 = vmul.f32 %v1890_v28, %v2237_v42  ;;  %v1895_v38 = vld [vmem:[#allocation3 + $0x1e8] sm:$0xff]  ;;  %v1896_v40 = vld [vmem:[#allocation3 + $0x1f0] sm:$0xff] }
 0x3f9   :  { %1502 = vst [vmem:[#allocation6 + $0xf8] sm:$0xff] %v1252_v43  ;;  %1503 = vst [vmem:[#allocation6 + $0x100] sm:$0xff] %v1253_v45  ;;  %v1278_v31 = vmul.f32 %v1891_v30, %v2237_v42  ;;  %v1279_v33 = vmul.f32 %v1892_v32, %v2237_v42  ;;  %v1280_v35 = vmul.f32 %v1893_v34, %v2237_v42  ;;  %v1897_v43 = vld [vmem:[#allocation3 + $0x1f8] sm:$0xff]  ;;  %v1898_v45 = vld [vmem:[#allocation3 + $0x200] sm:$0xff] }
 0x3fa   :  { %1504 = vst [vmem:[#allocation6 + $0x108] sm:$0xff] %v1254_v47  ;;  %1505 = vst [vmem:[#allocation6 + $0x110] sm:$0xff] %v1255_v49  ;;  %v1281_v37 = vmul.f32 %v1894_v36, %v2237_v42  ;;  %v1282_v39 = vmul.f32 %v1895_v38, %v2237_v42  ;;  %v1283_v41 = vmul.f32 %v1896_v40, %v2237_v42  ;;  %v1899_v47 = vld [vmem:[#allocation3 + $0x208] sm:$0xff]  ;;  %v1900_v49 = vld [vmem:[#allocation3 + $0x210] sm:$0xff] }
 0x3fb   :  { %1506 = vst [vmem:[#allocation6 + $0x118] sm:$0xff] %v1256_v51  ;;  %1507 = vst [vmem:[#allocation6 + $0x120] sm:$0xff] %v1257_v53  ;;  %v1284_v44 = vmul.f32 %v1897_v43, %v2237_v42  ;;  %v1285_v46 = vmul.f32 %v1898_v45, %v2237_v42  ;;  %v1286_v48 = vmul.f32 %v1899_v47, %v2237_v42  ;;  %v1901_v51 = vld [vmem:[#allocation3 + $0x218] sm:$0xff]  ;;  %v1902_v53 = vld [vmem:[#allocation3 + $0x220] sm:$0xff] }
 0x3fc   :  { %1508 = vst [vmem:[#allocation6 + $0x128] sm:$0xff] %v1258_v55  ;;  %1509 = vst [vmem:[#allocation6 + $0x130] sm:$0xff] %v1259_v56  ;;  %v1287_v50 = vmul.f32 %v1900_v49, %v2237_v42  ;;  %v1288_v52 = vmul.f32 %v1901_v51, %v2237_v42  ;;  %v1289_v54 = vmul.f32 %v1902_v53, %v2237_v42  ;;  %v1903_v55 = vld [vmem:[#allocation3 + $0x228] sm:$0xff]  ;;  %v1904_v56 = vld [vmem:[#allocation3 + $0x230] sm:$0xff] }
 0x3fd   :  { %1510 = vst [vmem:[#allocation6 + $0x138] sm:$0xff] %v1260_v58  ;;  %1511 = vst [vmem:[#allocation6 + $0x140] sm:$0xff] %v1261_v60  ;;  %v1290_v1 = vmul.f32 %v1903_v55, %v2237_v42  ;;  %v1291_v57 = vmul.f32 %v1904_v56, %v2237_v42  ;;  %v1905_v58 = vld [vmem:[#allocation3 + $0x238] sm:$0xff]  ;;  %v1906_v60 = vld [vmem:[#allocation3 + $0x240] sm:$0xff] }
 0x3fe   :  { %1512 = vst [vmem:[#allocation6 + $0x148] sm:$0xff] %v1262_v62  ;;  %1513 = vst [vmem:[#allocation6 + $0x150] sm:$0xff] %v1263_v2  ;;  %v1292_v59 = vmul.f32 %v1905_v58, %v2237_v42  ;;  %v1293_v61 = vmul.f32 %v1906_v60, %v2237_v42  ;;  %v1907_v62 = vld [vmem:[#allocation3 + $0x248] sm:$0xff]  ;;  %v1908_v2 = vld [vmem:[#allocation3 + $0x250] sm:$0xff] }
 0x3ff   :  { %1514 = vst [vmem:[#allocation6 + $0x158] sm:$0xff] %v1264_v4  ;;  %1515 = vst [vmem:[#allocation6 + $0x160] sm:$0xff] %v1265_v6  ;;  %v1294_v63 = vmul.f32 %v1907_v62, %v2237_v42  ;;  %v1295_v3 = vmul.f32 %v1908_v2, %v2237_v42  ;;  %v1909_v4 = vld [vmem:[#allocation3 + $0x258] sm:$0xff]  ;;  %v1910_v6 = vld [vmem:[#allocation3 + $0x260] sm:$0xff] }
 0x400   :  { %1516 = vst [vmem:[#allocation6 + $0x168] sm:$0xff] %v1266_v7  ;;  %1517 = vst [vmem:[#allocation6 + $0x170] sm:$0xff] %v1267_v9  ;;  %v1296_v5 = vmul.f32 %v1909_v4, %v2237_v42  ;;  %v1297_v0 = vmul.f32 %v1910_v6, %v2237_v42  ;;  %v1911_v7 = vld [vmem:[#allocation3 + $0x268] sm:$0xff]  ;;  %v1912_v9 = vld [vmem:[#allocation3 + $0x270] sm:$0xff] }
 0x401   :  { %1518 = vst [vmem:[#allocation6 + $0x178] sm:$0xff] %v1268_v11  ;;  %1519 = vst [vmem:[#allocation6 + $0x180] sm:$0xff] %v1269_v13  ;;  %v1298_v8 = vmul.f32 %v1911_v7, %v2237_v42  ;;  %v1299_v10 = vmul.f32 %v1912_v9, %v2237_v42  ;;  %v1913_v11 = vld [vmem:[#allocation3 + $0x278] sm:$0xff]  ;;  %v1914_v13 = vld [vmem:[#allocation3 + $0x280] sm:$0xff] }
 0x402   :  { %1520 = vst [vmem:[#allocation6 + $0x188] sm:$0xff] %v1270_v15  ;;  %1521 = vst [vmem:[#allocation6 + $0x190] sm:$0xff] %v1271_v17  ;;  %v1300_v12 = vmul.f32 %v1913_v11, %v2237_v42  ;;  %v1301_v14 = vmul.f32 %v1914_v13, %v2237_v42  ;;  %v1915_v15 = vld [vmem:[#allocation3 + $0x288] sm:$0xff]  ;;  %v1916_v17 = vld [vmem:[#allocation3 + $0x290] sm:$0xff] }
 0x403   :  { %1522 = vst [vmem:[#allocation6 + $0x198] sm:$0xff] %v1272_v19  ;;  %1523 = vst [vmem:[#allocation6 + $0x1a0] sm:$0xff] %v1273_v21  ;;  %v1302_v16 = vmul.f32 %v1915_v15, %v2237_v42  ;;  %v1303_v18 = vmul.f32 %v1916_v17, %v2237_v42  ;;  %v1917_v19 = vld [vmem:[#allocation3 + $0x298] sm:$0xff]  ;;  %v1918_v21 = vld [vmem:[#allocation3 + $0x2a0] sm:$0xff] }
 0x404   :  { %1524 = vst [vmem:[#allocation6 + $0x1a8] sm:$0xff] %v1274_v23  ;;  %1525 = vst [vmem:[#allocation6 + $0x1b0] sm:$0xff] %v1275_v25  ;;  %v1304_v20 = vmul.f32 %v1917_v19, %v2237_v42  ;;  %v1305_v22 = vmul.f32 %v1918_v21, %v2237_v42  ;;  %v1919_v23 = vld [vmem:[#allocation3 + $0x2a8] sm:$0xff]  ;;  %v1920_v25 = vld [vmem:[#allocation3 + $0x2b0] sm:$0xff] }
 0x405   :  { %1526 = vst [vmem:[#allocation6 + $0x1b8] sm:$0xff] %v1276_v27  ;;  %1527 = vst [vmem:[#allocation6 + $0x1c0] sm:$0xff] %v1277_v29  ;;  %v1306_v24 = vmul.f32 %v1919_v23, %v2237_v42  ;;  %v1307_v26 = vmul.f32 %v1920_v25, %v2237_v42  ;;  %v1921_v27 = vld [vmem:[#allocation3 + $0x2b8] sm:$0xff]  ;;  %v1922_v29 = vld [vmem:[#allocation3 + $0x2c0] sm:$0xff] }
 0x406   :  { %1528 = vst [vmem:[#allocation6 + $0x1c8] sm:$0xff] %v1278_v31  ;;  %1529 = vst [vmem:[#allocation6 + $0x1d0] sm:$0xff] %v1279_v33  ;;  %v1308_v28 = vmul.f32 %v1921_v27, %v2237_v42  ;;  %v1309_v30 = vmul.f32 %v1922_v29, %v2237_v42  ;;  %v1923_v31 = vld [vmem:[#allocation3 + $0x2c8] sm:$0xff]  ;;  %v1924_v33 = vld [vmem:[#allocation3 + $0x2d0] sm:$0xff] }
 0x407   :  { %1530 = vst [vmem:[#allocation6 + $0x1d8] sm:$0xff] %v1280_v35  ;;  %1531 = vst [vmem:[#allocation6 + $0x1e0] sm:$0xff] %v1281_v37  ;;  %v1310_v32 = vmul.f32 %v1923_v31, %v2237_v42  ;;  %v1311_v34 = vmul.f32 %v1924_v33, %v2237_v42  ;;  %v1925_v35 = vld [vmem:[#allocation3 + $0x2d8] sm:$0xff]  ;;  %v1926_v37 = vld [vmem:[#allocation3 + $0x2e0] sm:$0xff] }
 0x408   :  { %1532 = vst [vmem:[#allocation6 + $0x1e8] sm:$0xff] %v1282_v39  ;;  %1533 = vst [vmem:[#allocation6 + $0x1f0] sm:$0xff] %v1283_v41  ;;  %v1312_v36 = vmul.f32 %v1925_v35, %v2237_v42  ;;  %v1313_v38 = vmul.f32 %v1926_v37, %v2237_v42  ;;  %v1927_v39 = vld [vmem:[#allocation3 + $0x2e8] sm:$0xff]  ;;  %v1928_v41 = vld [vmem:[#allocation3 + $0x2f0] sm:$0xff] }
 0x409   :  { %1534 = vst [vmem:[#allocation6 + $0x1f8] sm:$0xff] %v1284_v44  ;;  %1535 = vst [vmem:[#allocation6 + $0x200] sm:$0xff] %v1285_v46  ;;  %v1314_v40 = vmul.f32 %v1927_v39, %v2237_v42  ;;  %v1315_v43 = vmul.f32 %v1928_v41, %v2237_v42  ;;  %v1929_v44 = vld [vmem:[#allocation3 + $0x2f8] sm:$0xff]  ;;  %v1930_v46 = vld [vmem:[#allocation3 + $0x300] sm:$0xff] }
 0x40a   :  { %1536 = vst [vmem:[#allocation6 + $0x208] sm:$0xff] %v1286_v48  ;;  %1537 = vst [vmem:[#allocation6 + $0x210] sm:$0xff] %v1287_v50  ;;  %v1316_v45 = vmul.f32 %v1929_v44, %v2237_v42  ;;  %v1317_v47 = vmul.f32 %v1930_v46, %v2237_v42  ;;  %v1931_v48 = vld [vmem:[#allocation3 + $0x308] sm:$0xff]  ;;  %v1932_v50 = vld [vmem:[#allocation3 + $0x310] sm:$0xff] }
 0x40b   :  { %1538 = vst [vmem:[#allocation6 + $0x218] sm:$0xff] %v1288_v52  ;;  %1539 = vst [vmem:[#allocation6 + $0x220] sm:$0xff] %v1289_v54  ;;  %v1318_v49 = vmul.f32 %v1931_v48, %v2237_v42  ;;  %v1319_v51 = vmul.f32 %v1932_v50, %v2237_v42  ;;  %v1933_v52 = vld [vmem:[#allocation3 + $0x318] sm:$0xff]  ;;  %v1934_v54 = vld [vmem:[#allocation3 + $0x320] sm:$0xff] }
 0x40c   :  { %1540 = vst [vmem:[#allocation6 + $0x228] sm:$0xff] %v1290_v1  ;;  %1541 = vst [vmem:[#allocation6 + $0x230] sm:$0xff] %v1291_v57  ;;  %v1320_v53 = vmul.f32 %v1933_v52, %v2237_v42  ;;  %v1321_v55 = vmul.f32 %v1934_v54, %v2237_v42  ;;  %v1935_v1 = vld [vmem:[#allocation3 + $0x328] sm:$0xff]  ;;  %v1936_v57 = vld [vmem:[#allocation3 + $0x330] sm:$0xff] }
 0x40d   :  { %1542 = vst [vmem:[#allocation6 + $0x238] sm:$0xff] %v1292_v59  ;;  %1543 = vst [vmem:[#allocation6 + $0x240] sm:$0xff] %v1293_v61  ;;  %v1322_v56 = vmul.f32 %v1935_v1, %v2237_v42  ;;  %v1323_v58 = vmul.f32 %v1936_v57, %v2237_v42  ;;  %v1937_v59 = vld [vmem:[#allocation3 + $0x338] sm:$0xff]  ;;  %v1938_v61 = vld [vmem:[#allocation3 + $0x340] sm:$0xff] }
 0x40e   :  { %1544 = vst [vmem:[#allocation6 + $0x248] sm:$0xff] %v1294_v63  ;;  %1545 = vst [vmem:[#allocation6 + $0x250] sm:$0xff] %v1295_v3  ;;  %v1324_v60 = vmul.f32 %v1937_v59, %v2237_v42  ;;  %v1325_v62 = vmul.f32 %v1938_v61, %v2237_v42  ;;  %v1939_v63 = vld [vmem:[#allocation3 + $0x348] sm:$0xff]  ;;  %v1940_v3 = vld [vmem:[#allocation3 + $0x350] sm:$0xff] }
 0x40f   :  { %1546 = vst [vmem:[#allocation6 + $0x258] sm:$0xff] %v1296_v5  ;;  %1547 = vst [vmem:[#allocation6 + $0x260] sm:$0xff] %v1297_v0  ;;  %v1326_v2 = vmul.f32 %v1939_v63, %v2237_v42  ;;  %v1327_v4 = vmul.f32 %v1940_v3, %v2237_v42  ;;  %v1941_v5 = vld [vmem:[#allocation3 + $0x358] sm:$0xff]  ;;  %v1942_v0 = vld [vmem:[#allocation3 + $0x360] sm:$0xff] }
 0x410   :  { %1548 = vst [vmem:[#allocation6 + $0x268] sm:$0xff] %v1298_v8  ;;  %1549 = vst [vmem:[#allocation6 + $0x270] sm:$0xff] %v1299_v10  ;;  %v1328_v6 = vmul.f32 %v1941_v5, %v2237_v42  ;;  %v1329_v7 = vmul.f32 %v1942_v0, %v2237_v42  ;;  %v1943_v8 = vld [vmem:[#allocation3 + $0x368] sm:$0xff]  ;;  %v1944_v10 = vld [vmem:[#allocation3 + $0x370] sm:$0xff] }
 0x411   :  { %1550 = vst [vmem:[#allocation6 + $0x278] sm:$0xff] %v1300_v12  ;;  %1551 = vst [vmem:[#allocation6 + $0x280] sm:$0xff] %v1301_v14  ;;  %v1330_v9 = vmul.f32 %v1943_v8, %v2237_v42  ;;  %v1331_v11 = vmul.f32 %v1944_v10, %v2237_v42  ;;  %v1945_v12 = vld [vmem:[#allocation3 + $0x378] sm:$0xff]  ;;  %v1946_v14 = vld [vmem:[#allocation3 + $0x380] sm:$0xff] }
 0x412   :  { %1552 = vst [vmem:[#allocation6 + $0x288] sm:$0xff] %v1302_v16  ;;  %1553 = vst [vmem:[#allocation6 + $0x290] sm:$0xff] %v1303_v18  ;;  %v1332_v13 = vmul.f32 %v1945_v12, %v2237_v42  ;;  %v1333_v15 = vmul.f32 %v1946_v14, %v2237_v42  ;;  %v1947_v16 = vld [vmem:[#allocation3 + $0x388] sm:$0xff]  ;;  %v1948_v18 = vld [vmem:[#allocation3 + $0x390] sm:$0xff] }
 0x413   :  { %1554 = vst [vmem:[#allocation6 + $0x298] sm:$0xff] %v1304_v20  ;;  %1555 = vst [vmem:[#allocation6 + $0x2a0] sm:$0xff] %v1305_v22  ;;  %v1334_v17 = vmul.f32 %v1947_v16, %v2237_v42  ;;  %v1335_v19 = vmul.f32 %v1948_v18, %v2237_v42  ;;  %v1949_v20 = vld [vmem:[#allocation3 + $0x398] sm:$0xff]  ;;  %v1950_v22 = vld [vmem:[#allocation3 + $0x3a0] sm:$0xff] }
 0x414   :  { %1556 = vst [vmem:[#allocation6 + $0x2a8] sm:$0xff] %v1306_v24  ;;  %1557 = vst [vmem:[#allocation6 + $0x2b0] sm:$0xff] %v1307_v26  ;;  %v1336_v21 = vmul.f32 %v1949_v20, %v2237_v42  ;;  %v1337_v23 = vmul.f32 %v1950_v22, %v2237_v42  ;;  %v1951_v24 = vld [vmem:[#allocation3 + $0x3a8] sm:$0xff]  ;;  %v1952_v26 = vld [vmem:[#allocation3 + $0x3b0] sm:$0xff] }
 0x415   :  { %1558 = vst [vmem:[#allocation6 + $0x2b8] sm:$0xff] %v1308_v28  ;;  %1559 = vst [vmem:[#allocation6 + $0x2c0] sm:$0xff] %v1309_v30  ;;  %v1338_v25 = vmul.f32 %v1951_v24, %v2237_v42  ;;  %v1339_v27 = vmul.f32 %v1952_v26, %v2237_v42  ;;  %v1953_v28 = vld [vmem:[#allocation3 + $0x3b8] sm:$0xff]  ;;  %v1954_v30 = vld [vmem:[#allocation3 + $0x3c0] sm:$0xff] }
 0x416   :  { %1560 = vst [vmem:[#allocation6 + $0x2c8] sm:$0xff] %v1310_v32  ;;  %1561 = vst [vmem:[#allocation6 + $0x2d0] sm:$0xff] %v1311_v34  ;;  %v1340_v29 = vmul.f32 %v1953_v28, %v2237_v42  ;;  %v1341_v31 = vmul.f32 %v1954_v30, %v2237_v42  ;;  %v1955_v32 = vld [vmem:[#allocation3 + $0x3c8] sm:$0xff]  ;;  %v1956_v34 = vld [vmem:[#allocation3 + $0x3d0] sm:$0xff] }
 0x417   :  { %1562 = vst [vmem:[#allocation6 + $0x2d8] sm:$0xff] %v1312_v36  ;;  %1563 = vst [vmem:[#allocation6 + $0x2e0] sm:$0xff] %v1313_v38  ;;  %v1342_v33 = vmul.f32 %v1955_v32, %v2237_v42  ;;  %v1343_v35 = vmul.f32 %v1956_v34, %v2237_v42  ;;  %v1957_v36 = vld [vmem:[#allocation3 + $0x3d8] sm:$0xff]  ;;  %v1958_v38 = vld [vmem:[#allocation3 + $0x3e0] sm:$0xff] }
 0x418   :  { %1564 = vst [vmem:[#allocation6 + $0x2e8] sm:$0xff] %v1314_v40  ;;  %1565 = vst [vmem:[#allocation6 + $0x2f0] sm:$0xff] %v1315_v43  ;;  %v1344_v37 = vmul.f32 %v1957_v36, %v2237_v42  ;;  %v1345_v39 = vmul.f32 %v1958_v38, %v2237_v42  ;;  %v1959_v40 = vld [vmem:[#allocation3 + $0x3e8] sm:$0xff]  ;;  %v1960_v43 = vld [vmem:[#allocation3 + $0x3f0] sm:$0xff] }
 0x419   :  { %1566 = vst [vmem:[#allocation6 + $0x2f8] sm:$0xff] %v1316_v45  ;;  %1567 = vst [vmem:[#allocation6 + $0x300] sm:$0xff] %v1317_v47  ;;  %v1346_v41 = vmul.f32 %v1959_v40, %v2237_v42  ;;  %v1347_v44 = vmul.f32 %v1960_v43, %v2237_v42  ;;  %v1961_v45 = vld [vmem:[#allocation3 + $0x3f8] sm:$0xff]  ;;  %v1962_v47 = vld [vmem:[#allocation3 + $0x400] sm:$0xff] }
 0x41a   :  { %1568 = vst [vmem:[#allocation6 + $0x308] sm:$0xff] %v1318_v49  ;;  %1569 = vst [vmem:[#allocation6 + $0x310] sm:$0xff] %v1319_v51  ;;  %v1348_v46 = vmul.f32 %v1961_v45, %v2237_v42  ;;  %v1349_v48 = vmul.f32 %v1962_v47, %v2237_v42  ;;  %v1963_v49 = vld [vmem:[#allocation3 + $0x408] sm:$0xff]  ;;  %v1964_v51 = vld [vmem:[#allocation3 + $0x410] sm:$0xff] }
 0x41b   :  { %1570 = vst [vmem:[#allocation6 + $0x318] sm:$0xff] %v1320_v53  ;;  %1571 = vst [vmem:[#allocation6 + $0x320] sm:$0xff] %v1321_v55  ;;  %v1350_v50 = vmul.f32 %v1963_v49, %v2237_v42  ;;  %v1351_v52 = vmul.f32 %v1964_v51, %v2237_v42  ;;  %v1965_v53 = vld [vmem:[#allocation3 + $0x418] sm:$0xff]  ;;  %v1966_v55 = vld [vmem:[#allocation3 + $0x420] sm:$0xff] }
 0x41c   :  { %1572 = vst [vmem:[#allocation6 + $0x328] sm:$0xff] %v1322_v56  ;;  %1573 = vst [vmem:[#allocation6 + $0x330] sm:$0xff] %v1323_v58  ;;  %v1352_v54 = vmul.f32 %v1965_v53, %v2237_v42  ;;  %v1353_v1 = vmul.f32 %v1966_v55, %v2237_v42  ;;  %v1967_v56 = vld [vmem:[#allocation3 + $0x428] sm:$0xff]  ;;  %v1968_v58 = vld [vmem:[#allocation3 + $0x430] sm:$0xff] }
 0x41d   :  { %1574 = vst [vmem:[#allocation6 + $0x338] sm:$0xff] %v1324_v60  ;;  %1575 = vst [vmem:[#allocation6 + $0x340] sm:$0xff] %v1325_v62  ;;  %v1354_v57 = vmul.f32 %v1967_v56, %v2237_v42  ;;  %v1355_v59 = vmul.f32 %v1968_v58, %v2237_v42  ;;  %v1969_v60 = vld [vmem:[#allocation3 + $0x438] sm:$0xff]  ;;  %v1970_v62 = vld [vmem:[#allocation3 + $0x440] sm:$0xff] }
 0x41e   :  { %1576 = vst [vmem:[#allocation6 + $0x348] sm:$0xff] %v1326_v2  ;;  %1577 = vst [vmem:[#allocation6 + $0x350] sm:$0xff] %v1327_v4  ;;  %v1356_v61 = vmul.f32 %v1969_v60, %v2237_v42  ;;  %v1357_v63 = vmul.f32 %v1970_v62, %v2237_v42  ;;  %v1971_v2 = vld [vmem:[#allocation3 + $0x448] sm:$0xff]  ;;  %v1972_v4 = vld [vmem:[#allocation3 + $0x450] sm:$0xff] }
 0x41f   :  { %1578 = vst [vmem:[#allocation6 + $0x358] sm:$0xff] %v1328_v6  ;;  %1579 = vst [vmem:[#allocation6 + $0x360] sm:$0xff] %v1329_v7  ;;  %v1358_v3 = vmul.f32 %v1971_v2, %v2237_v42  ;;  %v1359_v5 = vmul.f32 %v1972_v4, %v2237_v42  ;;  %v1973_v6 = vld [vmem:[#allocation3 + $0x458] sm:$0xff]  ;;  %v1974_v7 = vld [vmem:[#allocation3 + $0x460] sm:$0xff] }
 0x420   :  { %1580 = vst [vmem:[#allocation6 + $0x368] sm:$0xff] %v1330_v9  ;;  %1581 = vst [vmem:[#allocation6 + $0x370] sm:$0xff] %v1331_v11  ;;  %v1360_v0 = vmul.f32 %v1973_v6, %v2237_v42  ;;  %v1361_v8 = vmul.f32 %v1974_v7, %v2237_v42  ;;  %v1975_v9 = vld [vmem:[#allocation3 + $0x468] sm:$0xff]  ;;  %v1976_v11 = vld [vmem:[#allocation3 + $0x470] sm:$0xff] }
 0x421   :  { %1582 = vst [vmem:[#allocation6 + $0x378] sm:$0xff] %v1332_v13  ;;  %1583 = vst [vmem:[#allocation6 + $0x380] sm:$0xff] %v1333_v15  ;;  %v1362_v10 = vmul.f32 %v1975_v9, %v2237_v42  ;;  %v1363_v12 = vmul.f32 %v1976_v11, %v2237_v42  ;;  %v1977_v13 = vld [vmem:[#allocation3 + $0x478] sm:$0xff]  ;;  %v1978_v15 = vld [vmem:[#allocation3 + $0x480] sm:$0xff] }
 0x422   :  { %1584 = vst [vmem:[#allocation6 + $0x388] sm:$0xff] %v1334_v17  ;;  %1585 = vst [vmem:[#allocation6 + $0x390] sm:$0xff] %v1335_v19  ;;  %v1364_v14 = vmul.f32 %v1977_v13, %v2237_v42  ;;  %v1365_v16 = vmul.f32 %v1978_v15, %v2237_v42  ;;  %v1979_v17 = vld [vmem:[#allocation3 + $0x488] sm:$0xff]  ;;  %v1980_v19 = vld [vmem:[#allocation3 + $0x490] sm:$0xff] }
 0x423   :  { %1586 = vst [vmem:[#allocation6 + $0x398] sm:$0xff] %v1336_v21  ;;  %1587 = vst [vmem:[#allocation6 + $0x3a0] sm:$0xff] %v1337_v23  ;;  %v1366_v18 = vmul.f32 %v1979_v17, %v2237_v42  ;;  %v1367_v20 = vmul.f32 %v1980_v19, %v2237_v42  ;;  %v1981_v21 = vld [vmem:[#allocation3 + $0x498] sm:$0xff]  ;;  %v1982_v23 = vld [vmem:[#allocation3 + $0x4a0] sm:$0xff] }
 0x424   :  { %1588 = vst [vmem:[#allocation6 + $0x3a8] sm:$0xff] %v1338_v25  ;;  %1589 = vst [vmem:[#allocation6 + $0x3b0] sm:$0xff] %v1339_v27  ;;  %v1368_v22 = vmul.f32 %v1981_v21, %v2237_v42  ;;  %v1369_v24 = vmul.f32 %v1982_v23, %v2237_v42  ;;  %v1983_v25 = vld [vmem:[#allocation3 + $0x4a8] sm:$0xff]  ;;  %v1984_v27 = vld [vmem:[#allocation3 + $0x4b0] sm:$0xff] }
 0x425   :  { %1590 = vst [vmem:[#allocation6 + $0x3b8] sm:$0xff] %v1340_v29  ;;  %1591 = vst [vmem:[#allocation6 + $0x3c0] sm:$0xff] %v1341_v31  ;;  %v1370_v26 = vmul.f32 %v1983_v25, %v2237_v42  ;;  %v1371_v28 = vmul.f32 %v1984_v27, %v2237_v42  ;;  %v1985_v29 = vld [vmem:[#allocation3 + $0x4b8] sm:$0xff]  ;;  %v1986_v31 = vld [vmem:[#allocation3 + $0x4c0] sm:$0xff] }
 0x426   :  { %1592 = vst [vmem:[#allocation6 + $0x3c8] sm:$0xff] %v1342_v33  ;;  %1593 = vst [vmem:[#allocation6 + $0x3d0] sm:$0xff] %v1343_v35  ;;  %v1372_v30 = vmul.f32 %v1985_v29, %v2237_v42  ;;  %v1373_v32 = vmul.f32 %v1986_v31, %v2237_v42  ;;  %v1987_v33 = vld [vmem:[#allocation3 + $0x4c8] sm:$0xff]  ;;  %v1988_v35 = vld [vmem:[#allocation3 + $0x4d0] sm:$0xff] }
 0x427   :  { %1594 = vst [vmem:[#allocation6 + $0x3d8] sm:$0xff] %v1344_v37  ;;  %1595 = vst [vmem:[#allocation6 + $0x3e0] sm:$0xff] %v1345_v39  ;;  %v1374_v34 = vmul.f32 %v1987_v33, %v2237_v42  ;;  %v1375_v36 = vmul.f32 %v1988_v35, %v2237_v42  ;;  %v1989_v37 = vld [vmem:[#allocation3 + $0x4d8] sm:$0xff]  ;;  %v1990_v39 = vld [vmem:[#allocation3 + $0x4e0] sm:$0xff] }
 0x428   :  { %1596 = vst [vmem:[#allocation6 + $0x3e8] sm:$0xff] %v1346_v41  ;;  %1597 = vst [vmem:[#allocation6 + $0x3f0] sm:$0xff] %v1347_v44  ;;  %v1376_v38 = vmul.f32 %v1989_v37, %v2237_v42  ;;  %v1377_v40 = vmul.f32 %v1990_v39, %v2237_v42  ;;  %v1991_v41 = vld [vmem:[#allocation3 + $0x4e8] sm:$0xff]  ;;  %v1992_v44 = vld [vmem:[#allocation3 + $0x4f0] sm:$0xff] }
 0x429   :  { %1598 = vst [vmem:[#allocation6 + $0x3f8] sm:$0xff] %v1348_v46  ;;  %1599 = vst [vmem:[#allocation6 + $0x400] sm:$0xff] %v1349_v48  ;;  %v1378_v43 = vmul.f32 %v1991_v41, %v2237_v42  ;;  %v1379_v45 = vmul.f32 %v1992_v44, %v2237_v42  ;;  %v1993_v46 = vld [vmem:[#allocation3 + $0x4f8] sm:$0xff]  ;;  %v1994_v48 = vld [vmem:[#allocation3 + $0x500] sm:$0xff] }
 0x42a   :  { %1600 = vst [vmem:[#allocation6 + $0x408] sm:$0xff] %v1350_v50  ;;  %1601 = vst [vmem:[#allocation6 + $0x410] sm:$0xff] %v1351_v52  ;;  %v1380_v47 = vmul.f32 %v1993_v46, %v2237_v42  ;;  %v1381_v49 = vmul.f32 %v1994_v48, %v2237_v42  ;;  %v1995_v50 = vld [vmem:[#allocation3 + $0x508] sm:$0xff]  ;;  %v1996_v52 = vld [vmem:[#allocation3 + $0x510] sm:$0xff] }
 0x42b   :  { %1602 = vst [vmem:[#allocation6 + $0x418] sm:$0xff] %v1352_v54  ;;  %1603 = vst [vmem:[#allocation6 + $0x420] sm:$0xff] %v1353_v1  ;;  %v1382_v51 = vmul.f32 %v1995_v50, %v2237_v42  ;;  %v1383_v53 = vmul.f32 %v1996_v52, %v2237_v42  ;;  %v1997_v54 = vld [vmem:[#allocation3 + $0x518] sm:$0xff]  ;;  %v1998_v1 = vld [vmem:[#allocation3 + $0x520] sm:$0xff] }
 0x42c   :  { %1604 = vst [vmem:[#allocation6 + $0x428] sm:$0xff] %v1354_v57  ;;  %1605 = vst [vmem:[#allocation6 + $0x430] sm:$0xff] %v1355_v59  ;;  %v1384_v55 = vmul.f32 %v1997_v54, %v2237_v42  ;;  %v1385_v56 = vmul.f32 %v1998_v1, %v2237_v42  ;;  %v1999_v57 = vld [vmem:[#allocation3 + $0x528] sm:$0xff]  ;;  %v2000_v59 = vld [vmem:[#allocation3 + $0x530] sm:$0xff] }
 0x42d   :  { %1606 = vst [vmem:[#allocation6 + $0x438] sm:$0xff] %v1356_v61  ;;  %1607 = vst [vmem:[#allocation6 + $0x440] sm:$0xff] %v1357_v63  ;;  %v1386_v58 = vmul.f32 %v1999_v57, %v2237_v42  ;;  %v1387_v60 = vmul.f32 %v2000_v59, %v2237_v42  ;;  %v2001_v61 = vld [vmem:[#allocation3 + $0x538] sm:$0xff]  ;;  %v2002_v63 = vld [vmem:[#allocation3 + $0x540] sm:$0xff] }
 0x42e   :  { %1608 = vst [vmem:[#allocation6 + $0x448] sm:$0xff] %v1358_v3  ;;  %1609 = vst [vmem:[#allocation6 + $0x450] sm:$0xff] %v1359_v5  ;;  %v1388_v62 = vmul.f32 %v2001_v61, %v2237_v42  ;;  %v1389_v2 = vmul.f32 %v2002_v63, %v2237_v42  ;;  %v2003_v3 = vld [vmem:[#allocation3 + $0x548] sm:$0xff]  ;;  %v2004_v5 = vld [vmem:[#allocation3 + $0x550] sm:$0xff] }
 0x42f   :  { %1610 = vst [vmem:[#allocation6 + $0x458] sm:$0xff] %v1360_v0  ;;  %1611 = vst [vmem:[#allocation6 + $0x460] sm:$0xff] %v1361_v8  ;;  %v1390_v4 = vmul.f32 %v2003_v3, %v2237_v42  ;;  %v1391_v6 = vmul.f32 %v2004_v5, %v2237_v42  ;;  %v2005_v0 = vld [vmem:[#allocation3 + $0x558] sm:$0xff]  ;;  %v2006_v8 = vld [vmem:[#allocation3 + $0x560] sm:$0xff] }
 0x430   :  { %1612 = vst [vmem:[#allocation6 + $0x468] sm:$0xff] %v1362_v10  ;;  %1613 = vst [vmem:[#allocation6 + $0x470] sm:$0xff] %v1363_v12  ;;  %v1392_v7 = vmul.f32 %v2005_v0, %v2237_v42  ;;  %v1393_v9 = vmul.f32 %v2006_v8, %v2237_v42  ;;  %v2007_v10 = vld [vmem:[#allocation3 + $0x568] sm:$0xff]  ;;  %v2008_v12 = vld [vmem:[#allocation3 + $0x570] sm:$0xff] }
 0x431   :  { %1614 = vst [vmem:[#allocation6 + $0x478] sm:$0xff] %v1364_v14  ;;  %1615 = vst [vmem:[#allocation6 + $0x480] sm:$0xff] %v1365_v16  ;;  %v1394_v11 = vmul.f32 %v2007_v10, %v2237_v42  ;;  %v1395_v13 = vmul.f32 %v2008_v12, %v2237_v42  ;;  %v2009_v14 = vld [vmem:[#allocation3 + $0x578] sm:$0xff]  ;;  %v2010_v16 = vld [vmem:[#allocation3 + $0x580] sm:$0xff] }
 0x432   :  { %1616 = vst [vmem:[#allocation6 + $0x488] sm:$0xff] %v1366_v18  ;;  %1617 = vst [vmem:[#allocation6 + $0x490] sm:$0xff] %v1367_v20  ;;  %v1396_v15 = vmul.f32 %v2009_v14, %v2237_v42  ;;  %v1397_v17 = vmul.f32 %v2010_v16, %v2237_v42  ;;  %v2011_v18 = vld [vmem:[#allocation3 + $0x588] sm:$0xff]  ;;  %v2012_v20 = vld [vmem:[#allocation3 + $0x590] sm:$0xff] }
 0x433   :  { %1618 = vst [vmem:[#allocation6 + $0x498] sm:$0xff] %v1368_v22  ;;  %1619 = vst [vmem:[#allocation6 + $0x4a0] sm:$0xff] %v1369_v24  ;;  %v1398_v19 = vmul.f32 %v2011_v18, %v2237_v42  ;;  %v1399_v21 = vmul.f32 %v2012_v20, %v2237_v42  ;;  %v2013_v22 = vld [vmem:[#allocation3 + $0x598] sm:$0xff]  ;;  %v2014_v24 = vld [vmem:[#allocation3 + $0x5a0] sm:$0xff] }
 0x434   :  { %1620 = vst [vmem:[#allocation6 + $0x4a8] sm:$0xff] %v1370_v26  ;;  %1621 = vst [vmem:[#allocation6 + $0x4b0] sm:$0xff] %v1371_v28  ;;  %v1400_v23 = vmul.f32 %v2013_v22, %v2237_v42  ;;  %v1401_v25 = vmul.f32 %v2014_v24, %v2237_v42  ;;  %v2015_v26 = vld [vmem:[#allocation3 + $0x5a8] sm:$0xff]  ;;  %v2016_v28 = vld [vmem:[#allocation3 + $0x5b0] sm:$0xff] }
 0x435   :  { %1622 = vst [vmem:[#allocation6 + $0x4b8] sm:$0xff] %v1372_v30  ;;  %1623 = vst [vmem:[#allocation6 + $0x4c0] sm:$0xff] %v1373_v32  ;;  %v1402_v27 = vmul.f32 %v2015_v26, %v2237_v42  ;;  %v1403_v29 = vmul.f32 %v2016_v28, %v2237_v42  ;;  %v2017_v30 = vld [vmem:[#allocation3 + $0x5b8] sm:$0xff]  ;;  %v2018_v32 = vld [vmem:[#allocation3 + $0x5c0] sm:$0xff] }
 0x436   :  { %1624 = vst [vmem:[#allocation6 + $0x4c8] sm:$0xff] %v1374_v34  ;;  %1625 = vst [vmem:[#allocation6 + $0x4d0] sm:$0xff] %v1375_v36  ;;  %v1404_v31 = vmul.f32 %v2017_v30, %v2237_v42  ;;  %v1405_v33 = vmul.f32 %v2018_v32, %v2237_v42  ;;  %v2019_v34 = vld [vmem:[#allocation3 + $0x5c8] sm:$0xff]  ;;  %v2020_v36 = vld [vmem:[#allocation3 + $0x5d0] sm:$0xff] }
 0x437   :  { %1626 = vst [vmem:[#allocation6 + $0x4d8] sm:$0xff] %v1376_v38  ;;  %1627 = vst [vmem:[#allocation6 + $0x4e0] sm:$0xff] %v1377_v40  ;;  %v1406_v35 = vmul.f32 %v2019_v34, %v2237_v42  ;;  %v1407_v37 = vmul.f32 %v2020_v36, %v2237_v42  ;;  %v2021_v38 = vld [vmem:[#allocation3 + $0x5d8] sm:$0xff]  ;;  %v2022_v40 = vld [vmem:[#allocation3 + $0x5e0] sm:$0xff] }
 0x438   :  { %1628 = vst [vmem:[#allocation6 + $0x4e8] sm:$0xff] %v1378_v43  ;;  %1629 = vst [vmem:[#allocation6 + $0x4f0] sm:$0xff] %v1379_v45  ;;  %v1408_v39 = vmul.f32 %v2021_v38, %v2237_v42  ;;  %v1409_v41 = vmul.f32 %v2022_v40, %v2237_v42  ;;  %v2023_v43 = vld [vmem:[#allocation3 + $0x5e8] sm:$0xff]  ;;  %v2024_v45 = vld [vmem:[#allocation3 + $0x5f0] sm:$0xff] }
 0x439   :  { %1630 = vst [vmem:[#allocation6 + $0x4f8] sm:$0xff] %v1380_v47  ;;  %1631 = vst [vmem:[#allocation6 + $0x500] sm:$0xff] %v1381_v49  ;;  %v1410_v44 = vmul.f32 %v2023_v43, %v2237_v42  ;;  %v1411_v46 = vmul.f32 %v2024_v45, %v2237_v42  ;;  %v2025_v47 = vld [vmem:[#allocation3 + $0x5f8] sm:$0xff]  ;;  %v2026_v49 = vld [vmem:[#allocation3 + $0x600] sm:$0xff] }
 0x43a   :  { %1632 = vst [vmem:[#allocation6 + $0x508] sm:$0xff] %v1382_v51  ;;  %1633 = vst [vmem:[#allocation6 + $0x510] sm:$0xff] %v1383_v53  ;;  %v1412_v48 = vmul.f32 %v2025_v47, %v2237_v42  ;;  %v1413_v50 = vmul.f32 %v2026_v49, %v2237_v42  ;;  %v2027_v51 = vld [vmem:[#allocation3 + $0x608] sm:$0xff]  ;;  %v2028_v53 = vld [vmem:[#allocation3 + $0x610] sm:$0xff] }
 0x43b   :  { %1634 = vst [vmem:[#allocation6 + $0x518] sm:$0xff] %v1384_v55  ;;  %1635 = vst [vmem:[#allocation6 + $0x520] sm:$0xff] %v1385_v56  ;;  %v1414_v52 = vmul.f32 %v2027_v51, %v2237_v42  ;;  %v1415_v54 = vmul.f32 %v2028_v53, %v2237_v42  ;;  %v2029_v55 = vld [vmem:[#allocation3 + $0x618] sm:$0xff]  ;;  %v2030_v56 = vld [vmem:[#allocation3 + $0x620] sm:$0xff] }
 0x43c   :  { %1636 = vst [vmem:[#allocation6 + $0x528] sm:$0xff] %v1386_v58  ;;  %1637 = vst [vmem:[#allocation6 + $0x530] sm:$0xff] %v1387_v60  ;;  %v1416_v1 = vmul.f32 %v2029_v55, %v2237_v42  ;;  %v1417_v57 = vmul.f32 %v2030_v56, %v2237_v42  ;;  %v2031_v58 = vld [vmem:[#allocation3 + $0x628] sm:$0xff]  ;;  %v2032_v60 = vld [vmem:[#allocation3 + $0x630] sm:$0xff] }
 0x43d   :  { %1638 = vst [vmem:[#allocation6 + $0x538] sm:$0xff] %v1388_v62  ;;  %1639 = vst [vmem:[#allocation6 + $0x540] sm:$0xff] %v1389_v2  ;;  %v1418_v59 = vmul.f32 %v2031_v58, %v2237_v42  ;;  %v1419_v61 = vmul.f32 %v2032_v60, %v2237_v42  ;;  %v2033_v62 = vld [vmem:[#allocation3 + $0x638] sm:$0xff]  ;;  %v2034_v2 = vld [vmem:[#allocation3 + $0x640] sm:$0xff] }
 0x43e   :  { %1640 = vst [vmem:[#allocation6 + $0x548] sm:$0xff] %v1390_v4  ;;  %1641 = vst [vmem:[#allocation6 + $0x550] sm:$0xff] %v1391_v6  ;;  %v1420_v63 = vmul.f32 %v2033_v62, %v2237_v42  ;;  %v1421_v3 = vmul.f32 %v2034_v2, %v2237_v42  ;;  %v2035_v4 = vld [vmem:[#allocation3 + $0x648] sm:$0xff]  ;;  %v2036_v6 = vld [vmem:[#allocation3 + $0x650] sm:$0xff] }
 0x43f   :  { %1642 = vst [vmem:[#allocation6 + $0x558] sm:$0xff] %v1392_v7  ;;  %1643 = vst [vmem:[#allocation6 + $0x560] sm:$0xff] %v1393_v9  ;;  %v1422_v5 = vmul.f32 %v2035_v4, %v2237_v42  ;;  %v1423_v0 = vmul.f32 %v2036_v6, %v2237_v42  ;;  %v2037_v7 = vld [vmem:[#allocation3 + $0x658] sm:$0xff]  ;;  %v2038_v9 = vld [vmem:[#allocation3 + $0x660] sm:$0xff] }
 0x440   :  { %1644 = vst [vmem:[#allocation6 + $0x568] sm:$0xff] %v1394_v11  ;;  %1645 = vst [vmem:[#allocation6 + $0x570] sm:$0xff] %v1395_v13  ;;  %v1424_v8 = vmul.f32 %v2037_v7, %v2237_v42  ;;  %v1425_v10 = vmul.f32 %v2038_v9, %v2237_v42  ;;  %v2039_v11 = vld [vmem:[#allocation3 + $0x668] sm:$0xff]  ;;  %v2040_v13 = vld [vmem:[#allocation3 + $0x670] sm:$0xff] }
 0x441   :  { %1646 = vst [vmem:[#allocation6 + $0x578] sm:$0xff] %v1396_v15  ;;  %1647 = vst [vmem:[#allocation6 + $0x580] sm:$0xff] %v1397_v17  ;;  %v1426_v12 = vmul.f32 %v2039_v11, %v2237_v42  ;;  %v1427_v14 = vmul.f32 %v2040_v13, %v2237_v42  ;;  %v2041_v15 = vld [vmem:[#allocation3 + $0x678] sm:$0xff]  ;;  %v2042_v17 = vld [vmem:[#allocation3 + $0x680] sm:$0xff] }
 0x442   :  { %1648 = vst [vmem:[#allocation6 + $0x588] sm:$0xff] %v1398_v19  ;;  %1649 = vst [vmem:[#allocation6 + $0x590] sm:$0xff] %v1399_v21  ;;  %v1428_v16 = vmul.f32 %v2041_v15, %v2237_v42  ;;  %v1429_v18 = vmul.f32 %v2042_v17, %v2237_v42  ;;  %v2043_v19 = vld [vmem:[#allocation3 + $0x688] sm:$0xff]  ;;  %v2044_v21 = vld [vmem:[#allocation3 + $0x690] sm:$0xff] }
 0x443   :  { %1650 = vst [vmem:[#allocation6 + $0x598] sm:$0xff] %v1400_v23  ;;  %1651 = vst [vmem:[#allocation6 + $0x5a0] sm:$0xff] %v1401_v25  ;;  %v1430_v20 = vmul.f32 %v2043_v19, %v2237_v42  ;;  %v1431_v22 = vmul.f32 %v2044_v21, %v2237_v42  ;;  %v2045_v23 = vld [vmem:[#allocation3 + $0x698] sm:$0xff]  ;;  %v2046_v25 = vld [vmem:[#allocation3 + $0x6a0] sm:$0xff] }
 0x444   :  { %1652 = vst [vmem:[#allocation6 + $0x5a8] sm:$0xff] %v1402_v27  ;;  %1653 = vst [vmem:[#allocation6 + $0x5b0] sm:$0xff] %v1403_v29  ;;  %v1432_v24 = vmul.f32 %v2045_v23, %v2237_v42  ;;  %v1433_v26 = vmul.f32 %v2046_v25, %v2237_v42  ;;  %v2047_v27 = vld [vmem:[#allocation3 + $0x6a8] sm:$0xff]  ;;  %v2048_v29 = vld [vmem:[#allocation3 + $0x6b0] sm:$0xff] }
 0x445   :  { %1654 = vst [vmem:[#allocation6 + $0x5b8] sm:$0xff] %v1404_v31  ;;  %1655 = vst [vmem:[#allocation6 + $0x5c0] sm:$0xff] %v1405_v33  ;;  %v1434_v28 = vmul.f32 %v2047_v27, %v2237_v42  ;;  %v1435_v30 = vmul.f32 %v2048_v29, %v2237_v42  ;;  %v2049_v31 = vld [vmem:[#allocation3 + $0x6b8] sm:$0xff]  ;;  %v2050_v33 = vld [vmem:[#allocation3 + $0x6c0] sm:$0xff] }
 0x446   :  { %1656 = vst [vmem:[#allocation6 + $0x5c8] sm:$0xff] %v1406_v35  ;;  %1657 = vst [vmem:[#allocation6 + $0x5d0] sm:$0xff] %v1407_v37  ;;  %v1436_v32 = vmul.f32 %v2049_v31, %v2237_v42  ;;  %v1437_v34 = vmul.f32 %v2050_v33, %v2237_v42  ;;  %v2051_v35 = vld [vmem:[#allocation3 + $0x6c8] sm:$0xff]  ;;  %v2052_v37 = vld [vmem:[#allocation3 + $0x6d0] sm:$0xff] }
 0x447   :  { %1658 = vst [vmem:[#allocation6 + $0x5d8] sm:$0xff] %v1408_v39  ;;  %1659 = vst [vmem:[#allocation6 + $0x5e0] sm:$0xff] %v1409_v41  ;;  %v1438_v36 = vmul.f32 %v2051_v35, %v2237_v42  ;;  %v1439_v38 = vmul.f32 %v2052_v37, %v2237_v42  ;;  %v2053_v39 = vld [vmem:[#allocation3 + $0x6d8] sm:$0xff]  ;;  %v2054_v41 = vld [vmem:[#allocation3 + $0x6e0] sm:$0xff] }
 0x448   :  { %1660 = vst [vmem:[#allocation6 + $0x5e8] sm:$0xff] %v1410_v44  ;;  %1661 = vst [vmem:[#allocation6 + $0x5f0] sm:$0xff] %v1411_v46  ;;  %v1440_v40 = vmul.f32 %v2053_v39, %v2237_v42  ;;  %v1441_v43 = vmul.f32 %v2054_v41, %v2237_v42  ;;  %v2055_v44 = vld [vmem:[#allocation3 + $0x6e8] sm:$0xff]  ;;  %v2056_v46 = vld [vmem:[#allocation3 + $0x6f0] sm:$0xff] }
 0x449   :  { %1662 = vst [vmem:[#allocation6 + $0x5f8] sm:$0xff] %v1412_v48  ;;  %1663 = vst [vmem:[#allocation6 + $0x600] sm:$0xff] %v1413_v50  ;;  %v1442_v45 = vmul.f32 %v2055_v44, %v2237_v42  ;;  %v1443_v47 = vmul.f32 %v2056_v46, %v2237_v42  ;;  %v2057_v48 = vld [vmem:[#allocation3 + $0x6f8] sm:$0xff]  ;;  %v2058_v50 = vld [vmem:[#allocation3 + $0x700] sm:$0xff] }
 0x44a   :  { %1664 = vst [vmem:[#allocation6 + $0x608] sm:$0xff] %v1414_v52  ;;  %1665 = vst [vmem:[#allocation6 + $0x610] sm:$0xff] %v1415_v54  ;;  %v1444_v49 = vmul.f32 %v2057_v48, %v2237_v42  ;;  %v1445_v51 = vmul.f32 %v2058_v50, %v2237_v42  ;;  %v2059_v52 = vld [vmem:[#allocation3 + $0x708] sm:$0xff]  ;;  %v2060_v54 = vld [vmem:[#allocation3 + $0x710] sm:$0xff] }
 0x44b   :  { %1666 = vst [vmem:[#allocation6 + $0x618] sm:$0xff] %v1416_v1  ;;  %1667 = vst [vmem:[#allocation6 + $0x620] sm:$0xff] %v1417_v57  ;;  %v1446_v53 = vmul.f32 %v2059_v52, %v2237_v42  ;;  %v1447_v55 = vmul.f32 %v2060_v54, %v2237_v42  ;;  %v2061_v1 = vld [vmem:[#allocation3 + $0x718] sm:$0xff]  ;;  %v2062_v57 = vld [vmem:[#allocation3 + $0x720] sm:$0xff] }
 0x44c   :  { %1668 = vst [vmem:[#allocation6 + $0x628] sm:$0xff] %v1418_v59  ;;  %1669 = vst [vmem:[#allocation6 + $0x630] sm:$0xff] %v1419_v61  ;;  %v1448_v56 = vmul.f32 %v2061_v1, %v2237_v42  ;;  %v1449_v58 = vmul.f32 %v2062_v57, %v2237_v42  ;;  %v2063_v59 = vld [vmem:[#allocation3 + $0x728] sm:$0xff]  ;;  %v2064_v61 = vld [vmem:[#allocation3 + $0x730] sm:$0xff] }
 0x44d   :  { %1670 = vst [vmem:[#allocation6 + $0x638] sm:$0xff] %v1420_v63  ;;  %1671 = vst [vmem:[#allocation6 + $0x640] sm:$0xff] %v1421_v3  ;;  %v1450_v60 = vmul.f32 %v2063_v59, %v2237_v42  ;;  %v1451_v62 = vmul.f32 %v2064_v61, %v2237_v42  ;;  %v2065_v63 = vld [vmem:[#allocation3 + $0x738] sm:$0xff]  ;;  %v2066_v3 = vld [vmem:[#allocation3 + $0x740] sm:$0xff] }
 0x44e   :  { %1672 = vst [vmem:[#allocation6 + $0x648] sm:$0xff] %v1422_v5  ;;  %1673 = vst [vmem:[#allocation6 + $0x650] sm:$0xff] %v1423_v0  ;;  %v1452_v2 = vmul.f32 %v2065_v63, %v2237_v42  ;;  %v1453_v4 = vmul.f32 %v2066_v3, %v2237_v42  ;;  %v2067_v5 = vld [vmem:[#allocation3 + $0x748] sm:$0xff]  ;;  %v2068_v0 = vld [vmem:[#allocation3 + $0x750] sm:$0xff] }
 0x44f   :  { %1674 = vst [vmem:[#allocation6 + $0x658] sm:$0xff] %v1424_v8  ;;  %1675 = vst [vmem:[#allocation6 + $0x660] sm:$0xff] %v1425_v10  ;;  %v1454_v6 = vmul.f32 %v2067_v5, %v2237_v42  ;;  %v1455_v7 = vmul.f32 %v2068_v0, %v2237_v42  ;;  %v2069_v8 = vld [vmem:[#allocation3 + $0x758] sm:$0xff]  ;;  %v2070_v10 = vld [vmem:[#allocation3 + $0x760] sm:$0xff] }
 0x450   :  { %1676 = vst [vmem:[#allocation6 + $0x668] sm:$0xff] %v1426_v12  ;;  %1677 = vst [vmem:[#allocation6 + $0x670] sm:$0xff] %v1427_v14  ;;  %v1456_v9 = vmul.f32 %v2069_v8, %v2237_v42  ;;  %v1457_v11 = vmul.f32 %v2070_v10, %v2237_v42  ;;  %v2071_v12 = vld [vmem:[#allocation3 + $0x768] sm:$0xff]  ;;  %v2072_v14 = vld [vmem:[#allocation3 + $0x770] sm:$0xff] }
 0x451   :  { %1678 = vst [vmem:[#allocation6 + $0x678] sm:$0xff] %v1428_v16  ;;  %1679 = vst [vmem:[#allocation6 + $0x680] sm:$0xff] %v1429_v18  ;;  %v1458_v13 = vmul.f32 %v2071_v12, %v2237_v42  ;;  %v1459_v15 = vmul.f32 %v2072_v14, %v2237_v42  ;;  %v2073_v16 = vld [vmem:[#allocation3 + $0x778] sm:$0xff]  ;;  %v2074_v18 = vld [vmem:[#allocation3 + $0x780] sm:$0xff] }
 0x452   :  { %1680 = vst [vmem:[#allocation6 + $0x688] sm:$0xff] %v1430_v20  ;;  %1681 = vst [vmem:[#allocation6 + $0x690] sm:$0xff] %v1431_v22  ;;  %v1460_v17 = vmul.f32 %v2073_v16, %v2237_v42  ;;  %v1461_v19 = vmul.f32 %v2074_v18, %v2237_v42  ;;  %v2075_v20 = vld [vmem:[#allocation3 + $0x788] sm:$0xff]  ;;  %v2076_v22 = vld [vmem:[#allocation3 + $0x790] sm:$0xff] }
 0x453   :  { %1682 = vst [vmem:[#allocation6 + $0x698] sm:$0xff] %v1432_v24  ;;  %1683 = vst [vmem:[#allocation6 + $0x6a0] sm:$0xff] %v1433_v26  ;;  %v1462_v21 = vmul.f32 %v2075_v20, %v2237_v42  ;;  %v1463_v23 = vmul.f32 %v2076_v22, %v2237_v42  ;;  %v2077_v24 = vld [vmem:[#allocation3 + $0x798] sm:$0xff]  ;;  %v2078_v26 = vld [vmem:[#allocation3 + $0x7a0] sm:$0xff] }
 0x454   :  { %1684 = vst [vmem:[#allocation6 + $0x6a8] sm:$0xff] %v1434_v28  ;;  %1685 = vst [vmem:[#allocation6 + $0x6b0] sm:$0xff] %v1435_v30  ;;  %v1464_v25 = vmul.f32 %v2077_v24, %v2237_v42  ;;  %v1465_v27 = vmul.f32 %v2078_v26, %v2237_v42  ;;  %v2079_v28 = vld [vmem:[#allocation3 + $0x7a8] sm:$0xff]  ;;  %v2080_v30 = vld [vmem:[#allocation3 + $0x7b0] sm:$0xff] }
 0x455   :  { %1686 = vst [vmem:[#allocation6 + $0x6b8] sm:$0xff] %v1436_v32  ;;  %1687 = vst [vmem:[#allocation6 + $0x6c0] sm:$0xff] %v1437_v34  ;;  %v1466_v29 = vmul.f32 %v2079_v28, %v2237_v42  ;;  %v1467_v31 = vmul.f32 %v2080_v30, %v2237_v42  ;;  %v2081_v32 = vld [vmem:[#allocation3 + $0x7b8] sm:$0xff]  ;;  %v2082_v34 = vld [vmem:[#allocation3 + $0x7c0] sm:$0xff] }
 0x456   :  { %1688 = vst [vmem:[#allocation6 + $0x6c8] sm:$0xff] %v1438_v36  ;;  %1689 = vst [vmem:[#allocation6 + $0x6d0] sm:$0xff] %v1439_v38  ;;  %v1468_v33 = vmul.f32 %v2081_v32, %v2237_v42  ;;  %v1469_v35 = vmul.f32 %v2082_v34, %v2237_v42  ;;  %v2083_v36 = vld [vmem:[#allocation3 + $0x7c8] sm:$0xff] }
 0x457   :  { %1690 = vst [vmem:[#allocation6 + $0x6d8] sm:$0xff] %v1440_v40  ;;  %1691 = vst [vmem:[#allocation6 + $0x6e0] sm:$0xff] %v1441_v43  ;;  %v1470_v37 = vmul.f32 %v2083_v36, %v2237_v42 }
 0x458   :  { %1692 = vst [vmem:[#allocation6 + $0x6e8] sm:$0xff] %v1442_v45  ;;  %1693 = vst [vmem:[#allocation6 + $0x6f0] sm:$0xff] %v1443_v47 }
 0x459   :  { %1694 = vst [vmem:[#allocation6 + $0x6f8] sm:$0xff] %v1444_v49  ;;  %1695 = vst [vmem:[#allocation6 + $0x700] sm:$0xff] %v1445_v51 }
 0x45a   :  { %1696 = vst [vmem:[#allocation6 + $0x708] sm:$0xff] %v1446_v53  ;;  %1697 = vst [vmem:[#allocation6 + $0x710] sm:$0xff] %v1447_v55 }
 0x45b   :  { %1698 = vst [vmem:[#allocation6 + $0x718] sm:$0xff] %v1448_v56  ;;  %1699 = vst [vmem:[#allocation6 + $0x720] sm:$0xff] %v1449_v58 }
 0x45c   :  { %1700 = vst [vmem:[#allocation6 + $0x728] sm:$0xff] %v1450_v60  ;;  %1701 = vst [vmem:[#allocation6 + $0x730] sm:$0xff] %v1451_v62 }
 0x45d   :  { %1702 = vst [vmem:[#allocation6 + $0x738] sm:$0xff] %v1452_v2  ;;  %1703 = vst [vmem:[#allocation6 + $0x740] sm:$0xff] %v1453_v4 }
 0x45e   :  { %1704 = vst [vmem:[#allocation6 + $0x748] sm:$0xff] %v1454_v6  ;;  %1705 = vst [vmem:[#allocation6 + $0x750] sm:$0xff] %v1455_v7 }
 0x45f   :  { %1706 = vst [vmem:[#allocation6 + $0x758] sm:$0xff] %v1456_v9  ;;  %1707 = vst [vmem:[#allocation6 + $0x760] sm:$0xff] %v1457_v11 }
 0x460   :  { %1708 = vst [vmem:[#allocation6 + $0x768] sm:$0xff] %v1458_v13  ;;  %1709 = vst [vmem:[#allocation6 + $0x770] sm:$0xff] %v1459_v15 }
 0x461   :  { %1710 = vst [vmem:[#allocation6 + $0x778] sm:$0xff] %v1460_v17  ;;  %1711 = vst [vmem:[#allocation6 + $0x780] sm:$0xff] %v1461_v19 }
 0x462   :  { %1712 = vst [vmem:[#allocation6 + $0x788] sm:$0xff] %v1462_v21  ;;  %1713 = vst [vmem:[#allocation6 + $0x790] sm:$0xff] %v1463_v23 }
 0x463   :  { %1714 = vst [vmem:[#allocation6 + $0x798] sm:$0xff] %v1464_v25  ;;  %1715 = vst [vmem:[#allocation6 + $0x7a0] sm:$0xff] %v1465_v27 }
 0x464   :  { %1716 = vst [vmem:[#allocation6 + $0x7a8] sm:$0xff] %v1466_v29  ;;  %1717 = vst [vmem:[#allocation6 + $0x7b0] sm:$0xff] %v1467_v31 }
 0x465   :  { %1718 = vst [vmem:[#allocation6 + $0x7b8] sm:$0xff] %v1468_v33  ;;  %1719 = vst [vmem:[#allocation6 + $0x7c0] sm:$0xff] %v1469_v35 }
 0x466   :  { %1720 = vst [vmem:[#allocation6 + $0x7c8] sm:$0xff] %v1470_v37 }
 0x467   :  { %2117 = shalt.err (!%p2114_p12)
}
 0x468   :  { %s2118_s9 = scalar_lea.hbm %s2510_s3, 32000 }
 0x469   :  { %p2119_p13 = scmp.ne.s32.totalorder %s2510_s3, %s2118_s9  ;;  %p2122_p0 = scmp.lt.u32.totalorder %s2118_s9, %s2510_s3 }
 0x46b   :  { %p2124_p1 = pnand %p2122_p0, %p2119_p13 }
 0x46d   :  { %2127 = shalt.err (!%p2124_p1)
}
 0x46e   :  { %1732 = dma.vmem_to_hbm [thread:$0]  %s1727_s5, 32000, %s2510_s3, [#allocation5], %s2133_s22, %s2133_s22, %s2134_s23  }
 0x46f   :  { %2130 = dma.done.wait [#allocation5], 32000  }
 0x470   :  { %2131 = vsyncadd [#allocation5], 4294935296 }
 0x471   :  { %1736 = vsyncpa [#allocation4], 1 }
 0x472   :  { %1737 = vsyncpa [#allocation5], 1 }

</bundles_post_ra>
